<compile_context>
chip_gen: v5e
topology: v5e:2x2
jax: 0.10.0
libtpu: 0.0.40
codegen_flags: <defaults>
</compile_context>

<pallas_src>
import functools
import math

import jax
import jax.numpy as jnp
from jax.experimental import pallas as pl
from jax.experimental.pallas import tpu as pltpu

_EPS = 1e-6


def _vmem_limit_bytes():
    """~75% of physical VMEM (96 MiB on v5e/v6e, 48 MiB on v7x), clamped."""
    cap = 64 * 1024 * 1024
    try:
        cap = int(getattr(pltpu.get_tpu_info(), "vmem_capacity_bytes", cap))
    except Exception:
        pass
    return int(max(32 * 1024 * 1024, min(cap * 3 // 4, 112 * 1024 * 1024)))


_VMEM_LIMIT = _vmem_limit_bytes()


def _row_tile(dim, target):
    """Largest tile <= target dividing dim that is a multiple of 8 (sublane)
    or the full dim (keeps every BlockSpec (8,128)-legal)."""
    t = min(dim, target)
    while t > 1:
        if dim % t == 0 and (t == dim or t % 8 == 0):
            return t
        t -= 1
    return dim


def _ln_block(x, g, b, eps, *, approx):
    """Annotated-Transformer LayerNorm on a (rows, D) tile (unbiased std,
    eps added to std).  approx=True routes 1/x to the EUP."""
    d = x.shape[-1]
    mean = jnp.mean(x, axis=-1, keepdims=True)
    xc = x - mean
    var = jnp.sum(xc * xc, axis=-1, keepdims=True) * (1.0 / (d - 1))
    inv = pl.reciprocal(jnp.sqrt(var) + eps, approx=approx)
    return g * (xc * inv) + b


# ----------------------------------------------------------------------------
# 1) Fused LN1 + QKV projection -> head-major bf16 qkv (3, B, H, S, dh)
# ----------------------------------------------------------------------------
def _ln_qkv_kernel(x_ref, g_ref, b_ref, w_ref, bias_ref, o_ref, *, eps):
    # x:(1,tq,D) f32 | w:(3,H,D,dh) bf16 resident | bias:(3,H,1,dh) f32
    # o:(3,1,H,tq,dh) bf16.  Head-major emit: the per-(c,h) matmuls trade a
    # narrower MXU N-dim for zero lane-slicing in the attention inner loop.
    xn = _ln_block(x_ref[0], g_ref[...], b_ref[...], eps, approx=True
                   ).astype(jnp.bfloat16)
    nqkv, nheads = w_ref.shape[0], w_ref.shape[1]
    for c in range(nqkv):
        for h in range(nheads):
            y = jnp.dot(xn, w_ref[c, h], preferred_element_type=jnp.float32)
            o_ref[c, 0, h] = (y + bias_ref[c, h]).astype(o_ref.dtype)


def ln_qkv_proj(x, g, b, wqkv_hm, bqkv_hm, *, tq=512, eps=_EPS):
    B, S, D = x.shape
    _, H, _, dh = wqkv_hm.shape
    tq = _row_tile(S, tq)
    return pl.pallas_call(
        functools.partial(_ln_qkv_kernel, eps=eps),
        out_shape=jax.ShapeDtypeStruct((3, B, H, S, dh), jnp.bfloat16),
        grid=(B, S // tq),
        in_specs=[
            pl.BlockSpec((1, tq, D), lambda bi, i: (bi, i, 0)),       # x rows
            pl.BlockSpec((1, D), lambda bi, i: (0, 0)),               # ln1 gamma
            pl.BlockSpec((1, D), lambda bi, i: (0, 0)),               # ln1 beta
            pl.BlockSpec((3, H, D, dh), lambda bi, i: (0, 0, 0, 0)),  # W resident
            pl.BlockSpec((3, H, 1, dh), lambda bi, i: (0, 0, 0, 0)),  # b resident
        ],
        out_specs=pl.BlockSpec((3, 1, H, tq, dh),
                               lambda bi, i: (0, bi, 0, i, 0)),
        compiler_params=pltpu.CompilerParams(
            dimension_semantics=("parallel", "parallel"),
            vmem_limit_bytes=_VMEM_LIMIT),
    )(x, g, b, wqkv_hm, bqkv_hm)


# ----------------------------------------------------------------------------
# 2) Flash attention + fused Wo projection + bias + residual
# ----------------------------------------------------------------------------
def _attn_wo_kernel(q_ref, k_ref, v_ref, wo_ref, bo_ref, r_ref, o_ref,
                    m_sc, l_sc, acc_sc):
    ki = pl.program_id(2)

    @pl.when(ki == 0)
    def _():
        m_sc[...] = jnp.full_like(m_sc, -jnp.inf)
        l_sc[...] = jnp.zeros_like(l_sc)
        acc_sc[...] = jnp.zeros_like(acc_sc)

    q = q_ref[0, 0]          # (H, tq, dh) bf16 (1/sqrt(dh) folded into Wq/bq)
    k = k_ref[0, 0]          # (H, tk, dh) bf16
    v = v_ref[0, 0]          # (H, tk, dh) bf16

    # TODO(synk): attention mask not applied (Encoder exercised with mask=None).
    s = jnp.einsum('hqd,hkd->hqk', q, k,
                   preferred_element_type=jnp.float32)          # (H, tq, tk)
    m_new = jnp.maximum(m_sc[...], jnp.max(s, axis=-1, keepdims=True))
    alpha = jnp.exp(m_sc[...] - m_new)
    p = jnp.exp(s - m_new)
    l_sc[...] = alpha * l_sc[...] + jnp.sum(p, axis=-1, keepdims=True)
    acc_sc[...] = alpha * acc_sc[...] + jnp.einsum(
        'hqk,hkd->hqd', p.astype(jnp.bfloat16), v,
        preferred_element_type=jnp.float32)
    m_sc[...] = m_new

    @pl.when(ki == pl.num_programs(2) - 1)
    def _():
        ctx = acc_sc[...] * pl.reciprocal(l_sc[...], approx=True)   # (H,tq,dh)
        y = r_ref[0] + bo_ref[...]                                  # (tq, D)
        # Epilogue-only per-head Wo matmul (Wo resident in VMEM as bf16).
        for h in range(ctx.shape[0]):
            y = y + jnp.dot(ctx[h].astype(jnp.bfloat16), wo_ref[h],
                            preferred_element_type=jnp.float32)
        o_ref[0] = y


def attention_out_residual(qkv, resid, wo_hm, bo, *, tq=256, tk=512):
    _, B, H, S, dh = qkv.shape
    D = H * dh
    tq = _row_tile(S, tq)
    tk = _row_tile(S, tk)
    return pl.pallas_call(
        _attn_wo_kernel,
        out_shape=jax.ShapeDtypeStruct((B, S, D), jnp.float32),
        grid=(B, S // tq, S // tk),
        in_specs=[
            pl.BlockSpec((1, 1, H, tq, dh), lambda b, qi, ki: (0, b, 0, qi, 0)),
            pl.BlockSpec((1, 1, H, tk, dh), lambda b, qi, ki: (1, b, 0, ki, 0)),
            pl.BlockSpec((1, 1, H, tk, dh), lambda b, qi, ki: (2, b, 0, ki, 0)),
            pl.BlockSpec((H, dh, D), lambda b, qi, ki: (0, 0, 0)),   # Wo resident
            pl.BlockSpec((1, D), lambda b, qi, ki: (0, 0)),          # bo
            pl.BlockSpec((1, tq, D), lambda b, qi, ki: (b, qi, 0)),  # residual
        ],
        out_specs=pl.BlockSpec((1, tq, D), lambda b, qi, ki: (b, qi, 0)),
        scratch_shapes=[
            pltpu.VMEM((H, tq, 1), jnp.float32),    # running max
            pltpu.VMEM((H, tq, 1), jnp.float32),    # running sum
            pltpu.VMEM((H, tq, dh), jnp.float32),   # output accumulator
        ],
        input_output_aliases={5: 0},                # in-place residual stream
        compiler_params=pltpu.CompilerParams(
            dimension_semantics=("parallel", "parallel", "arbitrary"),
            vmem_limit_bytes=_VMEM_LIMIT),
    )(qkv, qkv, qkv, wo_hm, bo, resid)


# ----------------------------------------------------------------------------
# 3) Fused LN2 + FFN + residual (W1/W2 resident bf16, hidden never hits HBM)
# ----------------------------------------------------------------------------
def _ffn_kernel(x_ref, g_ref, b_ref, w1_ref, b1_ref, w2_ref, b2_ref, o_ref,
                *, eps):
    x = x_ref[0]                                                    # (tm, D)
    xn = _ln_block(x, g_ref[...], b_ref[...], eps, approx=True
                   ).astype(jnp.bfloat16)
    h = jnp.dot(xn, w1_ref[...], preferred_element_type=jnp.float32) + b1_ref[...]
    h = jnp.maximum(h, 0.0).astype(jnp.bfloat16)
    y = jnp.dot(h, w2_ref[...], preferred_element_type=jnp.float32)
    o_ref[0] = y + b2_ref[...] + x                                  # bias + resid


def ffn_residual(x, g, b, w1, b1, w2, b2, *, tm=512, eps=_EPS):
    B, S, D = x.shape
    F = w1.shape[1]
    tm = _row_tile(S, tm)
    return pl.pallas_call(
        functools.partial(_ffn_kernel, eps=eps),
        out_shape=jax.ShapeDtypeStruct((B, S, D), jnp.float32),
        grid=(B, S // tm),
        in_specs=[
            pl.BlockSpec((1, tm, D), lambda bi, i: (bi, i, 0)),  # x (LN + resid)
            pl.BlockSpec((1, D), lambda bi, i: (0, 0)),          # ln2 gamma
            pl.BlockSpec((1, D), lambda bi, i: (0, 0)),          # ln2 beta
            pl.BlockSpec((D, F), lambda bi, i: (0, 0)),          # W1 resident bf16
            pl.BlockSpec((1, F), lambda bi, i: (0, 0)),          # b1
            pl.BlockSpec((F, D), lambda bi, i: (0, 0)),          # W2 resident bf16
            pl.BlockSpec((1, D), lambda bi, i: (0, 0)),          # b2
        ],
        out_specs=pl.BlockSpec((1, tm, D), lambda bi, i: (bi, i, 0)),
        input_output_aliases={0: 0},                 # in-place residual stream
        compiler_params=pltpu.CompilerParams(
            dimension_semantics=("parallel", "parallel"),
            vmem_limit_bytes=_VMEM_LIMIT),
    )(x, g, b, w1, b1, w2, b2)


# ----------------------------------------------------------------------------
# 4) Final Encoder LayerNorm (exact reciprocal; user-visible output)
# ----------------------------------------------------------------------------
def _layernorm_kernel(x_ref, g_ref, b_ref, o_ref, *, eps):
    o_ref[0] = _ln_block(x_ref[0], g_ref[...], b_ref[...], eps, approx=False)


def layernorm(x, g, b, *, tm=512, eps=_EPS):
    B, S, D = x.shape
    tm = _row_tile(S, tm)
    return pl.pallas_call(
        functools.partial(_layernorm_kernel, eps=eps),
        out_shape=jax.ShapeDtypeStruct((B, S, D), jnp.float32),
        grid=(B, S // tm),
        in_specs=[pl.BlockSpec((1, tm, D), lambda bi, i: (bi, i, 0)),
                  pl.BlockSpec((1, D), lambda bi, i: (0, 0)),
                  pl.BlockSpec((1, D), lambda bi, i: (0, 0))],
        out_specs=pl.BlockSpec((1, tm, D), lambda bi, i: (bi, i, 0)),
        compiler_params=pltpu.CompilerParams(
            dimension_semantics=("parallel", "parallel"),
            vmem_limit_bytes=_VMEM_LIMIT),
    )(x, g, b)


# ----------------------------------------------------------------------------
# Encoder forward (N layers + final norm)
# ----------------------------------------------------------------------------
def encoder_forward(x, params):
    for lp in params["layers"]:
        # sublayer 0: x = x + Wo(SelfAttn(LN1(x))) + bo
        qkv = ln_qkv_proj(x, lp["ln1_g"], lp["ln1_b"],
                          lp["wqkv_hm"], lp["bqkv_hm"])
        x = attention_out_residual(qkv, x, lp["wo_hm"], lp["bo"])
        # sublayer 1: x = x + FFN(LN2(x))
        x = ffn_residual(x, lp["ln2_g"], lp["ln2_b"],
                         lp["w1"], lp["b1"], lp["w2"], lp["b2"])
    return layernorm(x, params["norm_g"], params["norm_b"])


# ----------------------------------------------------------------------------
# Parameter construction (f32 "PyTorch-style") + one-time prep for the kernels
# ----------------------------------------------------------------------------
def init_layer_params(key, d_model, d_ff):
    ks = jax.random.split(key, 4)
    s = 0.02
    return {
        "wqkv": s * jax.random.normal(ks[0], (3, d_model, d_model), jnp.float32),
        "bqkv": jnp.zeros((3, d_model), jnp.float32),
        "wo": s * jax.random.normal(ks[1], (d_model, d_model), jnp.float32),
        "bo": jnp.zeros((d_model,), jnp.float32),
        "w1": s * jax.random.normal(ks[2], (d_model, d_ff), jnp.float32),
        "b1": jnp.zeros((d_ff,), jnp.float32),
        "w2": s * jax.random.normal(ks[3], (d_ff, d_model), jnp.float32),
        "b2": jnp.zeros((d_model,), jnp.float32),
        "ln1_g": jnp.ones((d_model,), jnp.float32),
        "ln1_b": jnp.zeros((d_model,), jnp.float32),
        "ln2_g": jnp.ones((d_model,), jnp.float32),
        "ln2_b": jnp.zeros((d_model,), jnp.float32),
    }


def prepare_layer_params(lp, num_heads):
    """One-time weight prep (outside jit): bf16 storage, head-major layouts,
    and 1/sqrt(dh) folded into the Q projection weights/bias."""
    D = lp["wo"].shape[0]
    dh = D // num_heads
    scale = 1.0 / math.sqrt(dh)
    wqkv = lp["wqkv"].at[0].multiply(scale)
    bqkv = lp["bqkv"].at[0].multiply(scale)
    wqkv_hm = wqkv.reshape(3, D, num_heads, dh).transpose(0, 2, 1, 3)  # (3,H,D,dh)
    bqkv_hm = bqkv.reshape(3, num_heads, 1, dh)                        # (3,H,1,dh)
    return {
        "ln1_g": lp["ln1_g"].reshape(1, D), "ln1_b": lp["ln1_b"].reshape(1, D),
        "ln2_g": lp["ln2_g"].reshape(1, D), "ln2_b": lp["ln2_b"].reshape(1, D),
        "wqkv_hm": wqkv_hm.astype(jnp.bfloat16),
        "bqkv_hm": bqkv_hm,
        "wo_hm": lp["wo"].reshape(num_heads, dh, D).astype(jnp.bfloat16),
        "bo": lp["bo"].reshape(1, D),
        "w1": lp["w1"].astype(jnp.bfloat16), "b1": lp["b1"].reshape(1, -1),
        "w2": lp["w2"].astype(jnp.bfloat16), "b2": lp["b2"].reshape(1, D),
    }


def init_encoder_params(key, n_layers, d_model, d_ff, num_heads):
    keys = jax.random.split(key, n_layers)
    return {
        "layers": [prepare_layer_params(init_layer_params(k, d_model, d_ff),
                                        num_heads) for k in keys],
        "norm_g": jnp.ones((1, d_model), jnp.float32),
        "norm_b": jnp.zeros((1, d_model), jnp.float32),
    }


# ----------------------------------------------------------------------------
# Pure-JAX reference (same prepared weights) for a sanity check
# ----------------------------------------------------------------------------
def _ln_ref(x, g, b, eps=_EPS):
    mean = x.mean(-1, keepdims=True)
    xc = x - mean
    var = (xc * xc).sum(-1, keepdims=True) / (x.shape[-1] - 1)
    return g * xc / (jnp.sqrt(var) + eps) + b


def encoder_reference(x, params):
    for lp in params["layers"]:
        w = lp["wqkv_hm"].astype(jnp.float32)
        bq = lp["bqkv_hm"]
        wo = lp["wo_hm"].astype(jnp.float32)
        xn = _ln_ref(x, lp["ln1_g"], lp["ln1_b"])
        q = jnp.einsum('bsd,hdf->bhsf', xn, w[0]) + bq[0][None]
        k = jnp.einsum('bsd,hdf->bhsf', xn, w[1]) + bq[1][None]
        v = jnp.einsum('bsd,hdf->bhsf', xn, w[2]) + bq[2][None]
        p = jax.nn.softmax(jnp.einsum('bhqf,bhkf->bhqk', q, k), axis=-1)
        ctx = jnp.einsum('bhqk,bhkf->bhqf', p, v)
        x = x + jnp.einsum('bhqf,hfd->bqd', ctx, wo) + lp["bo"]
        xn2 = _ln_ref(x, lp["ln2_g"], lp["ln2_b"])
        h = jax.nn.relu(xn2 @ lp["w1"].astype(jnp.float32) + lp["b1"])
        x = x + h @ lp["w2"].astype(jnp.float32) + lp["b2"]
    return _ln_ref(x, params["norm_g"], params["norm_b"])


if __name__ == "__main__":
    B, S, D, H, DFF, N_LAYERS = 2, 8, 32, 4, 64, 2
    key = jax.random.PRNGKey(0)
    kx, kp = jax.random.split(key)
    x = jax.random.normal(kx, (B, S, D), jnp.float32)
    params = init_encoder_params(kp, N_LAYERS, D, DFF, H)

    fwd = jax.jit(encoder_forward)
    out = jax.block_until_ready(fwd(x, params))

    assert out.shape == (B, S, D)
    assert bool(jnp.all(jnp.isfinite(out)))
    ref = encoder_reference(x, params)
    assert float(jnp.max(jnp.abs(out - ref))) < 0.1, "mismatch vs reference"
    print("KERNEL_OK")
</pallas_src>

<mosaic_0001>
module attributes {stable_mosaic.version = 11 : i64} {
  func.func @_attn_wo_kernel(%arg0: i32, %arg1: i32, %arg2: i32, %arg3: memref<1x1x4x8x8xbf16, #tpu.memory_space<vmem>>, %arg4: memref<1x1x4x8x8xbf16, #tpu.memory_space<vmem>>, %arg5: memref<1x1x4x8x8xbf16, #tpu.memory_space<vmem>>, %arg6: memref<4x8x32xbf16, #tpu.memory_space<vmem>>, %arg7: memref<1x32xf32, #tpu.memory_space<vmem>>, %arg8: memref<1x8x32xf32, #tpu.memory_space<vmem>>, %arg9: memref<1x8x32xf32, #tpu.memory_space<vmem>>, %arg10: memref<4x8x1xf32, #tpu.memory_space<vmem>>, %arg11: memref<4x8x1xf32, #tpu.memory_space<vmem>>, %arg12: memref<4x8x8xf32, #tpu.memory_space<vmem>>) attributes {dimension_semantics = [#tpu.dimension_semantics<parallel>, #tpu.dimension_semantics<parallel>, #tpu.dimension_semantics<arbitrary>], iteration_bounds = array<i64: 2, 1, 1>, scalar_prefetch = 0 : i64, scratch_operands = 3 : i64, tpu.core_type = #tpu.core_type<tc>, window_params = [{transform_indices = @transform_0, window_bounds = array<i64: 1, 1, 4, 8, 8>}, {transform_indices = @transform_1, window_bounds = array<i64: 1, 1, 4, 8, 8>}, {transform_indices = @transform_2, window_bounds = array<i64: 1, 1, 4, 8, 8>}, {pipeline_mode = #tpu.pipeline_mode<synchronous>, transform_indices = @transform_3, window_bounds = array<i64: 4, 8, 32>}, {pipeline_mode = #tpu.pipeline_mode<synchronous>, transform_indices = @transform_4, window_bounds = array<i64: 1, 32>}, {transform_indices = @transform_5, window_bounds = array<i64: 1, 8, 32>}, {transform_indices = @transform_6, window_bounds = array<i64: 1, 8, 32>}]} {
    %c0_i32 = arith.constant 0 : i32
    %0 = arith.cmpi eq, %arg2, %c0_i32 : i32
    %1 = arith.extui %0 : i1 to i32
    %c0_i32_0 = arith.constant 0 : i32
    %2 = arith.cmpi ne, %1, %c0_i32_0 : i32
    scf.if %2 {
      %cst_41 = arith.constant 0xFF800000 : f32
      %37 = vector.broadcast %cst_41 : f32 to vector<4x8x1xf32>
      %c0_42 = arith.constant 0 : index
      %c0_43 = arith.constant 0 : index
      %c0_44 = arith.constant 0 : index
      %38 = vector.load %arg10[%c0_42, %c0_43, %c0_44] : memref<4x8x1xf32, #tpu.memory_space<vmem>>, vector<4x8x1xf32>
      tpu.vector_store %arg10[%c0_42, %c0_43, %c0_44], %37 {strides = array<i32>} : memref<4x8x1xf32, #tpu.memory_space<vmem>>, vector<4x8x1xf32>,
      %cst_45 = arith.constant 0.000000e+00 : f32
      %39 = vector.broadcast %cst_45 : f32 to vector<4x8x1xf32>
      %c0_46 = arith.constant 0 : index
      %c0_47 = arith.constant 0 : index
      %c0_48 = arith.constant 0 : index
      %40 = vector.load %arg11[%c0_46, %c0_47, %c0_48] : memref<4x8x1xf32, #tpu.memory_space<vmem>>, vector<4x8x1xf32>
      tpu.vector_store %arg11[%c0_46, %c0_47, %c0_48], %39 {strides = array<i32>} : memref<4x8x1xf32, #tpu.memory_space<vmem>>, vector<4x8x1xf32>,
      %cst_49 = arith.constant 0.000000e+00 : f32
      %41 = vector.broadcast %cst_49 : f32 to vector<4x8x8xf32>
      %c0_50 = arith.constant 0 : index
      %c0_51 = arith.constant 0 : index
      %c0_52 = arith.constant 0 : index
      %42 = vector.load %arg12[%c0_50, %c0_51, %c0_52] : memref<4x8x8xf32, #tpu.memory_space<vmem>>, vector<4x8x8xf32>
      tpu.vector_store %arg12[%c0_50, %c0_51, %c0_52], %41 {strides = array<i32>} : memref<4x8x8xf32, #tpu.memory_space<vmem>>, vector<4x8x8xf32>,
    } else {
    }
    %c0 = arith.constant 0 : index
    %c0_1 = arith.constant 0 : index
    %c0_2 = arith.constant 0 : index
    %c0_3 = arith.constant 0 : index
    %c0_4 = arith.constant 0 : index
    %3 = vector.load %arg3[%c0, %c0_1, %c0_2, %c0_3, %c0_4] : memref<1x1x4x8x8xbf16, #tpu.memory_space<vmem>>, vector<1x1x4x8x8xbf16>
    %4 = vector.shape_cast %3 : vector<1x1x4x8x8xbf16> to vector<4x8x8xbf16>
    %c0_5 = arith.constant 0 : index
    %c0_6 = arith.constant 0 : index
    %c0_7 = arith.constant 0 : index
    %c0_8 = arith.constant 0 : index
    %c0_9 = arith.constant 0 : index
    %5 = vector.load %arg4[%c0_5, %c0_6, %c0_7, %c0_8, %c0_9] : memref<1x1x4x8x8xbf16, #tpu.memory_space<vmem>>, vector<1x1x4x8x8xbf16>
    %6 = vector.shape_cast %5 : vector<1x1x4x8x8xbf16> to vector<4x8x8xbf16>
    %c0_10 = arith.constant 0 : index
    %c0_11 = arith.constant 0 : index
    %c0_12 = arith.constant 0 : index
    %c0_13 = arith.constant 0 : index
    %c0_14 = arith.constant 0 : index
    %7 = vector.load %arg5[%c0_10, %c0_11, %c0_12, %c0_13, %c0_14] : memref<1x1x4x8x8xbf16, #tpu.memory_space<vmem>>, vector<1x1x4x8x8xbf16>
    %8 = vector.shape_cast %7 : vector<1x1x4x8x8xbf16> to vector<4x8x8xbf16>
    "tpu.trace_start"() <{level = 10 : i32, message = "hqd,hkd->hqk"}> : () -> ()
    %cst = arith.constant dense<0.000000e+00> : vector<4x8x8xf32>
    %9 = tpu.matmul %4, %6, %cst {dimension_numbers = #tpu.dot_dimension_numbers<[2], [2], [1], [1], [0, 0, 0, 1, 1, 1], [0], [0]>} : vector<4x8x8xbf16>, vector<4x8x8xbf16>, vector<4x8x8xf32> -> vector<4x8x8xf32>
    "tpu.trace_stop"() : () -> ()
    %c0_15 = arith.constant 0 : index
    %c0_16 = arith.constant 0 : index
    %c0_17 = arith.constant 0 : index
    %10 = vector.load %arg10[%c0_15, %c0_16, %c0_17] : memref<4x8x1xf32, #tpu.memory_space<vmem>>, vector<4x8x1xf32>
    %cst_18 = arith.constant dense<0xFF800000> : vector<4x8xf32>
    %11 = vector.multi_reduction <maximumf>, %9, %cst_18 [2] : vector<4x8x8xf32> to vector<4x8xf32>
    %12 = vector.shape_cast %11 : vector<4x8xf32> to vector<4x8x1xf32>
    %13 = arith.maximumf %10, %12 : vector<4x8x1xf32>
    %c0_19 = arith.constant 0 : index
    %c0_20 = arith.constant 0 : index
    %c0_21 = arith.constant 0 : index
    %14 = vector.load %arg10[%c0_19, %c0_20, %c0_21] : memref<4x8x1xf32, #tpu.memory_space<vmem>>, vector<4x8x1xf32>
    %15 = arith.subf %14, %13 : vector<4x8x1xf32>
    %16 = math.exp %15 : vector<4x8x1xf32>
    %17 = vector.broadcast %13 : vector<4x8x1xf32> to vector<4x8x8xf32>
    %18 = arith.subf %9, %17 : vector<4x8x8xf32>
    %19 = math.exp %18 : vector<4x8x8xf32>
    %c0_22 = arith.constant 0 : index
    %c0_23 = arith.constant 0 : index
    %c0_24 = arith.constant 0 : index
    %20 = vector.load %arg11[%c0_22, %c0_23, %c0_24] : memref<4x8x1xf32, #tpu.memory_space<vmem>>, vector<4x8x1xf32>
    %21 = arith.mulf %16, %20 : vector<4x8x1xf32>
    %cst_25 = arith.constant dense<0.000000e+00> : vector<4x8xf32>
    %22 = vector.multi_reduction <add>, %19, %cst_25 [2] : vector<4x8x8xf32> to vector<4x8xf32>
    %23 = vector.shape_cast %22 : vector<4x8xf32> to vector<4x8x1xf32>
    %24 = arith.addf %21, %23 : vector<4x8x1xf32>
    %c0_26 = arith.constant 0 : index
    %c0_27 = arith.constant 0 : index
    %c0_28 = arith.constant 0 : index
    %25 = vector.load %arg11[%c0_26, %c0_27, %c0_28] : memref<4x8x1xf32, #tpu.memory_space<vmem>>, vector<4x8x1xf32>
    tpu.vector_store %arg11[%c0_26, %c0_27, %c0_28], %24 {strides = array<i32>} : memref<4x8x1xf32, #tpu.memory_space<vmem>>, vector<4x8x1xf32>,
    %c0_29 = arith.constant 0 : index
    %c0_30 = arith.constant 0 : index
    %c0_31 = arith.constant 0 : index
    %26 = vector.load %arg12[%c0_29, %c0_30, %c0_31] : memref<4x8x8xf32, #tpu.memory_space<vmem>>, vector<4x8x8xf32>
    %27 = vector.broadcast %16 : vector<4x8x1xf32> to vector<4x8x8xf32>
    %28 = arith.mulf %27, %26 : vector<4x8x8xf32>
    %29 = arith.truncf %19 : vector<4x8x8xf32> to vector<4x8x8xbf16>
    "tpu.trace_start"() <{level = 10 : i32, message = "hqk,hkd->hqd"}> : () -> ()
    %cst_32 = arith.constant dense<0.000000e+00> : vector<4x8x8xf32>
    %30 = tpu.matmul %29, %8, %cst_32 {dimension_numbers = #tpu.dot_dimension_numbers<[2], [1], [1], [2], [0, 0, 0, 1, 1, 2], [0], [0]>} : vector<4x8x8xbf16>, vector<4x8x8xbf16>, vector<4x8x8xf32> -> vector<4x8x8xf32>
    "tpu.trace_stop"() : () -> ()
    %31 = arith.addf %28, %30 : vector<4x8x8xf32>
    %c0_33 = arith.constant 0 : index
    %c0_34 = arith.constant 0 : index
    %c0_35 = arith.constant 0 : index
    %32 = vector.load %arg12[%c0_33, %c0_34, %c0_35] : memref<4x8x8xf32, #tpu.memory_space<vmem>>, vector<4x8x8xf32>
    tpu.vector_store %arg12[%c0_33, %c0_34, %c0_35], %31 {strides = array<i32>} : memref<4x8x8xf32, #tpu.memory_space<vmem>>, vector<4x8x8xf32>,
    %c0_36 = arith.constant 0 : index
    %c0_37 = arith.constant 0 : index
    %c0_38 = arith.constant 0 : index
    %33 = vector.load %arg10[%c0_36, %c0_37, %c0_38] : memref<4x8x1xf32, #tpu.memory_space<vmem>>, vector<4x8x1xf32>
    tpu.vector_store %arg10[%c0_36, %c0_37, %c0_38], %13 {strides = array<i32>} : memref<4x8x1xf32, #tpu.memory_space<vmem>>, vector<4x8x1xf32>,
    %c0_i32_39 = arith.constant 0 : i32
    %34 = arith.cmpi eq, %arg2, %c0_i32_39 : i32
    %35 = arith.extui %34 : i1 to i32
    %c0_i32_40 = arith.constant 0 : i32
    %36 = arith.cmpi ne, %35, %c0_i32_40 : i32
    scf.if %36 {
      %c0_41 = arith.constant 0 : index
      %c0_42 = arith.constant 0 : index
      %c0_43 = arith.constant 0 : index
      %37 = vector.load %arg12[%c0_41, %c0_42, %c0_43] : memref<4x8x8xf32, #tpu.memory_space<vmem>>, vector<4x8x8xf32>
      %c0_44 = arith.constant 0 : index
      %c0_45 = arith.constant 0 : index
      %c0_46 = arith.constant 0 : index
      %38 = vector.load %arg11[%c0_44, %c0_45, %c0_46] : memref<4x8x1xf32, #tpu.memory_space<vmem>>, vector<4x8x1xf32>
      %39 = tpu.reciprocal %38 {approx = true} : vector<4x8x1xf32> -> vector<4x8x1xf32>
      %40 = vector.broadcast %39 : vector<4x8x1xf32> to vector<4x8x8xf32>
      %41 = arith.mulf %37, %40 : vector<4x8x8xf32>
      %c0_47 = arith.constant 0 : index
      %c0_48 = arith.constant 0 : index
      %c0_49 = arith.constant 0 : index
      %42 = vector.load %arg8[%c0_47, %c0_48, %c0_49] : memref<1x8x32xf32, #tpu.memory_space<vmem>>, vector<1x8x32xf32>
      %43 = vector.shape_cast %42 : vector<1x8x32xf32> to vector<8x32xf32>
      %c0_50 = arith.constant 0 : index
      %c0_51 = arith.constant 0 : index
      %44 = vector.load %arg7[%c0_50, %c0_51] : memref<1x32xf32, #tpu.memory_space<vmem>>, vector<1x32xf32>
      %45 = vector.broadcast %44 : vector<1x32xf32> to vector<8x32xf32>
      %46 = arith.addf %43, %45 : vector<8x32xf32>
      %47 = vector.extract_strided_slice %41 {offsets = [0, 0, 0], sizes = [1, 8, 8], strides = [1, 1, 1]} : vector<4x8x8xf32> to vector<1x8x8xf32>
      %48 = vector.shape_cast %47 : vector<1x8x8xf32> to vector<8x8xf32>
      %49 = arith.truncf %48 : vector<8x8xf32> to vector<8x8xbf16>
      %c0_52 = arith.constant 0 : index
      %c0_53 = arith.constant 0 : index
      %c0_54 = arith.constant 0 : index
      %50 = vector.load %arg6[%c0_52, %c0_53, %c0_54] : memref<4x8x32xbf16, #tpu.memory_space<vmem>>, vector<1x8x32xbf16>
      %51 = vector.shape_cast %50 : vector<1x8x32xbf16> to vector<8x32xbf16>
      %cst_55 = arith.constant dense<0.000000e+00> : vector<8x32xf32>
      %52 = tpu.matmul %49, %51, %cst_55 {dimension_numbers = #tpu.dot_dimension_numbers<[1], [0], [0], [1], [0, 0, 1, 1], [], []>} : vector<8x8xbf16>, vector<8x32xbf16>, vector<8x32xf32> -> vector<8x32xf32>
      %53 = arith.addf %46, %52 : vector<8x32xf32>
      %54 = vector.extract_strided_slice %41 {offsets = [1, 0, 0], sizes = [1, 8, 8], strides = [1, 1, 1]} : vector<4x8x8xf32> to vector<1x8x8xf32>
      %55 = vector.shape_cast %54 : vector<1x8x8xf32> to vector<8x8xf32>
      %56 = arith.truncf %55 : vector<8x8xf32> to vector<8x8xbf16>
      %c1 = arith.constant 1 : index
      %c0_56 = arith.constant 0 : index
      %c0_57 = arith.constant 0 : index
      %57 = vector.load %arg6[%c1, %c0_56, %c0_57] : memref<4x8x32xbf16, #tpu.memory_space<vmem>>, vector<1x8x32xbf16>
      %58 = vector.shape_cast %57 : vector<1x8x32xbf16> to vector<8x32xbf16>
      %cst_58 = arith.constant dense<0.000000e+00> : vector<8x32xf32>
      %59 = tpu.matmul %56, %58, %cst_58 {dimension_numbers = #tpu.dot_dimension_numbers<[1], [0], [0], [1], [0, 0, 1, 1], [], []>} : vector<8x8xbf16>, vector<8x32xbf16>, vector<8x32xf32> -> vector<8x32xf32>
      %60 = arith.addf %53, %59 : vector<8x32xf32>
      %61 = vector.extract_strided_slice %41 {offsets = [2, 0, 0], sizes = [1, 8, 8], strides = [1, 1, 1]} : vector<4x8x8xf32> to vector<1x8x8xf32>
      %62 = vector.shape_cast %61 : vector<1x8x8xf32> to vector<8x8xf32>
      %63 = arith.truncf %62 : vector<8x8xf32> to vector<8x8xbf16>
      %c2 = arith.constant 2 : index
      %c0_59 = arith.constant 0 : index
      %c0_60 = arith.constant 0 : index
      %64 = vector.load %arg6[%c2, %c0_59, %c0_60] : memref<4x8x32xbf16, #tpu.memory_space<vmem>>, vector<1x8x32xbf16>
      %65 = vector.shape_cast %64 : vector<1x8x32xbf16> to vector<8x32xbf16>
      %cst_61 = arith.constant dense<0.000000e+00> : vector<8x32xf32>
      %66 = tpu.matmul %63, %65, %cst_61 {dimension_numbers = #tpu.dot_dimension_numbers<[1], [0], [0], [1], [0, 0, 1, 1], [], []>} : vector<8x8xbf16>, vector<8x32xbf16>, vector<8x32xf32> -> vector<8x32xf32>
      %67 = arith.addf %60, %66 : vector<8x32xf32>
      %68 = vector.extract_strided_slice %41 {offsets = [3, 0, 0], sizes = [1, 8, 8], strides = [1, 1, 1]} : vector<4x8x8xf32> to vector<1x8x8xf32>
      %69 = vector.shape_cast %68 : vector<1x8x8xf32> to vector<8x8xf32>
      %70 = arith.truncf %69 : vector<8x8xf32> to vector<8x8xbf16>
      %c3 = arith.constant 3 : index
      %c0_62 = arith.constant 0 : index
      %c0_63 = arith.constant 0 : index
      %71 = vector.load %arg6[%c3, %c0_62, %c0_63] : memref<4x8x32xbf16, #tpu.memory_space<vmem>>, vector<1x8x32xbf16>
      %72 = vector.shape_cast %71 : vector<1x8x32xbf16> to vector<8x32xbf16>
      %cst_64 = arith.constant dense<0.000000e+00> : vector<8x32xf32>
      %73 = tpu.matmul %70, %72, %cst_64 {dimension_numbers = #tpu.dot_dimension_numbers<[1], [0], [0], [1], [0, 0, 1, 1], [], []>} : vector<8x8xbf16>, vector<8x32xbf16>, vector<8x32xf32> -> vector<8x32xf32>
      %74 = arith.addf %67, %73 : vector<8x32xf32>
      %c0_65 = arith.constant 0 : index
      %c0_66 = arith.constant 0 : index
      %c0_67 = arith.constant 0 : index
      %75 = vector.load %arg9[%c0_65, %c0_66, %c0_67] : memref<1x8x32xf32, #tpu.memory_space<vmem>>, vector<1x8x32xf32>
      %76 = vector.shape_cast %75 : vector<1x8x32xf32> to vector<8x32xf32>
      %77 = vector.shape_cast %74 : vector<8x32xf32> to vector<1x8x32xf32>
      tpu.vector_store %arg9[%c0_65, %c0_66, %c0_67], %77 {strides = array<i32>} : memref<1x8x32xf32, #tpu.memory_space<vmem>>, vector<1x8x32xf32>,
    } else {
    }
    return
  }
  func.func @transform_0(%arg0: i32, %arg1: i32, %arg2: i32) -> (i32, i32, i32, i32, i32) {
    %c0_i32 = arith.constant 0 : i32
    %c0_i32_0 = arith.constant 0 : i32
    %c0_i32_1 = arith.constant 0 : i32
    %c0_i32_2 = arith.constant 0 : i32
    return %c0_i32, %arg0, %c0_i32_0, %arg1, %c0_i32_1 : i32, i32, i32, i32, i32
  }
  func.func @transform_1(%arg0: i32, %arg1: i32, %arg2: i32) -> (i32, i32, i32, i32, i32) {
    %c1_i32 = arith.constant 1 : i32
    %c0_i32 = arith.constant 0 : i32
    %c0_i32_0 = arith.constant 0 : i32
    %c0_i32_1 = arith.constant 0 : i32
    return %c1_i32, %arg0, %c0_i32, %arg2, %c0_i32_0 : i32, i32, i32, i32, i32
  }
  func.func @transform_2(%arg0: i32, %arg1: i32, %arg2: i32) -> (i32, i32, i32, i32, i32) {
    %c2_i32 = arith.constant 2 : i32
    %c0_i32 = arith.constant 0 : i32
    %c0_i32_0 = arith.constant 0 : i32
    %c0_i32_1 = arith.constant 0 : i32
    return %c2_i32, %arg0, %c0_i32, %arg2, %c0_i32_0 : i32, i32, i32, i32, i32
  }
  func.func @transform_3(%arg0: i32, %arg1: i32, %arg2: i32) -> (i32, i32, i32) {
    %c0_i32 = arith.constant 0 : i32
    %c0_i32_0 = arith.constant 0 : i32
    %c0_i32_1 = arith.constant 0 : i32
    %c0_i32_2 = arith.constant 0 : i32
    return %c0_i32, %c0_i32_0, %c0_i32_1 : i32, i32, i32
  }
  func.func @transform_4(%arg0: i32, %arg1: i32, %arg2: i32) -> (i32, i32) {
    %c0_i32 = arith.constant 0 : i32
    %c0_i32_0 = arith.constant 0 : i32
    %c0_i32_1 = arith.constant 0 : i32
    return %c0_i32, %c0_i32_0 : i32, i32
  }
  func.func @transform_5(%arg0: i32, %arg1: i32, %arg2: i32) -> (i32, i32, i32) {
    %c0_i32 = arith.constant 0 : i32
    %c0_i32_0 = arith.constant 0 : i32
    return %arg0, %arg1, %c0_i32 : i32, i32, i32
  }
  func.func @transform_6(%arg0: i32, %arg1: i32, %arg2: i32) -> (i32, i32, i32) {
    %c0_i32 = arith.constant 0 : i32
    %c0_i32_0 = arith.constant 0 : i32
    return %arg0, %arg1, %c0_i32 : i32, i32, i32
  }
}

module attributes {stable_mosaic.version = 11 : i64} {
  func.func @_ln_qkv_kernel(%arg0: i32, %arg1: i32, %arg2: memref<1x8x32xf32, #tpu.memory_space<vmem>>, %arg3: memref<1x32xf32, #tpu.memory_space<vmem>>, %arg4: memref<1x32xf32, #tpu.memory_space<vmem>>, %arg5: memref<3x4x32x8xbf16, #tpu.memory_space<vmem>>, %arg6: memref<3x4x1x8xf32, #tpu.memory_space<vmem>>, %arg7: memref<3x1x4x8x8xbf16, #tpu.memory_space<vmem>>) attributes {dimension_semantics = [#tpu.dimension_semantics<parallel>, #tpu.dimension_semantics<parallel>], iteration_bounds = array<i64: 2, 1>, scalar_prefetch = 0 : i64, scratch_operands = 0 : i64, tpu.core_type = #tpu.core_type<tc>, window_params = [{transform_indices = @transform_0, window_bounds = array<i64: 1, 8, 32>}, {pipeline_mode = #tpu.pipeline_mode<synchronous>, transform_indices = @transform_1, window_bounds = array<i64: 1, 32>}, {pipeline_mode = #tpu.pipeline_mode<synchronous>, transform_indices = @transform_2, window_bounds = array<i64: 1, 32>}, {pipeline_mode = #tpu.pipeline_mode<synchronous>, transform_indices = @transform_3, window_bounds = array<i64: 3, 4, 32, 8>}, {pipeline_mode = #tpu.pipeline_mode<synchronous>, transform_indices = @transform_4, window_bounds = array<i64: 3, 4, 1, 8>}, {transform_indices = @transform_5, window_bounds = array<i64: 3, 1, 4, 8, 8>}]} {
    %c0 = arith.constant 0 : index
    %c0_0 = arith.constant 0 : index
    %c0_1 = arith.constant 0 : index
    %0 = vector.load %arg2[%c0, %c0_0, %c0_1] : memref<1x8x32xf32, #tpu.memory_space<vmem>>, vector<1x8x32xf32>
    %1 = vector.shape_cast %0 : vector<1x8x32xf32> to vector<8x32xf32>
    %c0_2 = arith.constant 0 : index
    %c0_3 = arith.constant 0 : index
    %2 = vector.load %arg3[%c0_2, %c0_3] : memref<1x32xf32, #tpu.memory_space<vmem>>, vector<1x32xf32>
    %c0_4 = arith.constant 0 : index
    %c0_5 = arith.constant 0 : index
    %3 = vector.load %arg4[%c0_4, %c0_5] : memref<1x32xf32, #tpu.memory_space<vmem>>, vector<1x32xf32>
    %cst = arith.constant dense<0.000000e+00> : vector<8xf32>
    %4 = vector.multi_reduction <add>, %1, %cst [1] : vector<8x32xf32> to vector<8xf32>
    %5 = vector.shape_cast %4 : vector<8xf32> to vector<8x1xf32>
    %cst_6 = arith.constant 3.200000e+01 : f32
    %6 = vector.broadcast %cst_6 : f32 to vector<8x1xf32>
    %7 = arith.divf %5, %6 : vector<8x1xf32>
    %8 = vector.broadcast %7 : vector<8x1xf32> to vector<8x32xf32>
    %9 = arith.subf %1, %8 : vector<8x32xf32>
    %10 = arith.mulf %9, %9 : vector<8x32xf32>
    %cst_7 = arith.constant dense<0.000000e+00> : vector<8xf32>
    %11 = vector.multi_reduction <add>, %10, %cst_7 [1] : vector<8x32xf32> to vector<8xf32>
    %12 = vector.shape_cast %11 : vector<8xf32> to vector<8x1xf32>
    %cst_8 = arith.constant 0.0322580636 : f32
    %13 = vector.broadcast %cst_8 : f32 to vector<8x1xf32>
    %14 = arith.mulf %12, %13 : vector<8x1xf32>
    %15 = math.sqrt %14 : vector<8x1xf32>
    %cst_9 = arith.constant 9.99999997E-7 : f32
    %16 = vector.broadcast %cst_9 : f32 to vector<8x1xf32>
    %17 = arith.addf %15, %16 : vector<8x1xf32>
    %18 = tpu.reciprocal %17 {approx = true} : vector<8x1xf32> -> vector<8x1xf32>
    %19 = vector.broadcast %18 : vector<8x1xf32> to vector<8x32xf32>
    %20 = arith.mulf %9, %19 : vector<8x32xf32>
    %21 = vector.broadcast %2 : vector<1x32xf32> to vector<8x32xf32>
    %22 = arith.mulf %21, %20 : vector<8x32xf32>
    %23 = vector.broadcast %3 : vector<1x32xf32> to vector<8x32xf32>
    %24 = arith.addf %22, %23 : vector<8x32xf32>
    %25 = arith.truncf %24 : vector<8x32xf32> to vector<8x32xbf16>
    %c0_10 = arith.constant 0 : index
    %c0_11 = arith.constant 0 : index
    %c0_12 = arith.constant 0 : index
    %c0_13 = arith.constant 0 : index
    %26 = vector.load %arg5[%c0_10, %c0_11, %c0_12, %c0_13] : memref<3x4x32x8xbf16, #tpu.memory_space<vmem>>, vector<1x1x32x8xbf16>
    %27 = vector.shape_cast %26 : vector<1x1x32x8xbf16> to vector<32x8xbf16>
    %cst_14 = arith.constant dense<0.000000e+00> : vector<8x8xf32>
    %28 = tpu.matmul %25, %27, %cst_14 {dimension_numbers = #tpu.dot_dimension_numbers<[1], [0], [0], [1], [0, 0, 1, 1], [], []>} : vector<8x32xbf16>, vector<32x8xbf16>, vector<8x8xf32> -> vector<8x8xf32>
    %c0_15 = arith.constant 0 : index
    %c0_16 = arith.constant 0 : index
    %c0_17 = arith.constant 0 : index
    %c0_18 = arith.constant 0 : index
    %29 = vector.load %arg6[%c0_15, %c0_16, %c0_17, %c0_18] : memref<3x4x1x8xf32, #tpu.memory_space<vmem>>, vector<1x1x1x8xf32>
    %30 = vector.shape_cast %29 : vector<1x1x1x8xf32> to vector<1x8xf32>
    %31 = vector.broadcast %30 : vector<1x8xf32> to vector<8x8xf32>
    %32 = arith.addf %28, %31 : vector<8x8xf32>
    %33 = arith.truncf %32 : vector<8x8xf32> to vector<8x8xbf16>
    %c0_19 = arith.constant 0 : index
    %c0_20 = arith.constant 0 : index
    %c0_21 = arith.constant 0 : index
    %c0_22 = arith.constant 0 : index
    %c0_23 = arith.constant 0 : index
    %34 = vector.load %arg7[%c0_19, %c0_20, %c0_21, %c0_22, %c0_23] : memref<3x1x4x8x8xbf16, #tpu.memory_space<vmem>>, vector<1x1x1x8x8xbf16>
    %35 = vector.shape_cast %34 : vector<1x1x1x8x8xbf16> to vector<8x8xbf16>
    %36 = vector.shape_cast %33 : vector<8x8xbf16> to vector<1x1x1x8x8xbf16>
    tpu.vector_store %arg7[%c0_19, %c0_20, %c0_21, %c0_22, %c0_23], %36 {strides = array<i32>} : memref<3x1x4x8x8xbf16, #tpu.memory_space<vmem>>, vector<1x1x1x8x8xbf16>,
    %c0_24 = arith.constant 0 : index
    %c1 = arith.constant 1 : index
    %c0_25 = arith.constant 0 : index
    %c0_26 = arith.constant 0 : index
    %37 = vector.load %arg5[%c0_24, %c1, %c0_25, %c0_26] : memref<3x4x32x8xbf16, #tpu.memory_space<vmem>>, vector<1x1x32x8xbf16>
    %38 = vector.shape_cast %37 : vector<1x1x32x8xbf16> to vector<32x8xbf16>
    %cst_27 = arith.constant dense<0.000000e+00> : vector<8x8xf32>
    %39 = tpu.matmul %25, %38, %cst_27 {dimension_numbers = #tpu.dot_dimension_numbers<[1], [0], [0], [1], [0, 0, 1, 1], [], []>} : vector<8x32xbf16>, vector<32x8xbf16>, vector<8x8xf32> -> vector<8x8xf32>
    %c0_28 = arith.constant 0 : index
    %c1_29 = arith.constant 1 : index
    %c0_30 = arith.constant 0 : index
    %c0_31 = arith.constant 0 : index
    %40 = vector.load %arg6[%c0_28, %c1_29, %c0_30, %c0_31] : memref<3x4x1x8xf32, #tpu.memory_space<vmem>>, vector<1x1x1x8xf32>
    %41 = vector.shape_cast %40 : vector<1x1x1x8xf32> to vector<1x8xf32>
    %42 = vector.broadcast %41 : vector<1x8xf32> to vector<8x8xf32>
    %43 = arith.addf %39, %42 : vector<8x8xf32>
    %44 = arith.truncf %43 : vector<8x8xf32> to vector<8x8xbf16>
    %c0_32 = arith.constant 0 : index
    %c0_33 = arith.constant 0 : index
    %c1_34 = arith.constant 1 : index
    %c0_35 = arith.constant 0 : index
    %c0_36 = arith.constant 0 : index
    %45 = vector.load %arg7[%c0_32, %c0_33, %c1_34, %c0_35, %c0_36] : memref<3x1x4x8x8xbf16, #tpu.memory_space<vmem>>, vector<1x1x1x8x8xbf16>
    %46 = vector.shape_cast %45 : vector<1x1x1x8x8xbf16> to vector<8x8xbf16>
    %47 = vector.shape_cast %44 : vector<8x8xbf16> to vector<1x1x1x8x8xbf16>
    tpu.vector_store %arg7[%c0_32, %c0_33, %c1_34, %c0_35, %c0_36], %47 {strides = array<i32>} : memref<3x1x4x8x8xbf16, #tpu.memory_space<vmem>>, vector<1x1x1x8x8xbf16>,
    %c0_37 = arith.constant 0 : index
    %c2 = arith.constant 2 : index
    %c0_38 = arith.constant 0 : index
    %c0_39 = arith.constant 0 : index
    %48 = vector.load %arg5[%c0_37, %c2, %c0_38, %c0_39] : memref<3x4x32x8xbf16, #tpu.memory_space<vmem>>, vector<1x1x32x8xbf16>
    %49 = vector.shape_cast %48 : vector<1x1x32x8xbf16> to vector<32x8xbf16>
    %cst_40 = arith.constant dense<0.000000e+00> : vector<8x8xf32>
    %50 = tpu.matmul %25, %49, %cst_40 {dimension_numbers = #tpu.dot_dimension_numbers<[1], [0], [0], [1], [0, 0, 1, 1], [], []>} : vector<8x32xbf16>, vector<32x8xbf16>, vector<8x8xf32> -> vector<8x8xf32>
    %c0_41 = arith.constant 0 : index
    %c2_42 = arith.constant 2 : index
    %c0_43 = arith.constant 0 : index
    %c0_44 = arith.constant 0 : index
    %51 = vector.load %arg6[%c0_41, %c2_42, %c0_43, %c0_44] : memref<3x4x1x8xf32, #tpu.memory_space<vmem>>, vector<1x1x1x8xf32>
    %52 = vector.shape_cast %51 : vector<1x1x1x8xf32> to vector<1x8xf32>
    %53 = vector.broadcast %52 : vector<1x8xf32> to vector<8x8xf32>
    %54 = arith.addf %50, %53 : vector<8x8xf32>
    %55 = arith.truncf %54 : vector<8x8xf32> to vector<8x8xbf16>
    %c0_45 = arith.constant 0 : index
    %c0_46 = arith.constant 0 : index
    %c2_47 = arith.constant 2 : index
    %c0_48 = arith.constant 0 : index
    %c0_49 = arith.constant 0 : index
    %56 = vector.load %arg7[%c0_45, %c0_46, %c2_47, %c0_48, %c0_49] : memref<3x1x4x8x8xbf16, #tpu.memory_space<vmem>>, vector<1x1x1x8x8xbf16>
    %57 = vector.shape_cast %56 : vector<1x1x1x8x8xbf16> to vector<8x8xbf16>
    %58 = vector.shape_cast %55 : vector<8x8xbf16> to vector<1x1x1x8x8xbf16>
    tpu.vector_store %arg7[%c0_45, %c0_46, %c2_47, %c0_48, %c0_49], %58 {strides = array<i32>} : memref<3x1x4x8x8xbf16, #tpu.memory_space<vmem>>, vector<1x1x1x8x8xbf16>,
    %c0_50 = arith.constant 0 : index
    %c3 = arith.constant 3 : index
    %c0_51 = arith.constant 0 : index
    %c0_52 = arith.constant 0 : index
    %59 = vector.load %arg5[%c0_50, %c3, %c0_51, %c0_52] : memref<3x4x32x8xbf16, #tpu.memory_space<vmem>>, vector<1x1x32x8xbf16>
    %60 = vector.shape_cast %59 : vector<1x1x32x8xbf16> to vector<32x8xbf16>
    %cst_53 = arith.constant dense<0.000000e+00> : vector<8x8xf32>
    %61 = tpu.matmul %25, %60, %cst_53 {dimension_numbers = #tpu.dot_dimension_numbers<[1], [0], [0], [1], [0, 0, 1, 1], [], []>} : vector<8x32xbf16>, vector<32x8xbf16>, vector<8x8xf32> -> vector<8x8xf32>
    %c0_54 = arith.constant 0 : index
    %c3_55 = arith.constant 3 : index
    %c0_56 = arith.constant 0 : index
    %c0_57 = arith.constant 0 : index
    %62 = vector.load %arg6[%c0_54, %c3_55, %c0_56, %c0_57] : memref<3x4x1x8xf32, #tpu.memory_space<vmem>>, vector<1x1x1x8xf32>
    %63 = vector.shape_cast %62 : vector<1x1x1x8xf32> to vector<1x8xf32>
    %64 = vector.broadcast %63 : vector<1x8xf32> to vector<8x8xf32>
    %65 = arith.addf %61, %64 : vector<8x8xf32>
    %66 = arith.truncf %65 : vector<8x8xf32> to vector<8x8xbf16>
    %c0_58 = arith.constant 0 : index
    %c0_59 = arith.constant 0 : index
    %c3_60 = arith.constant 3 : index
    %c0_61 = arith.constant 0 : index
    %c0_62 = arith.constant 0 : index
    %67 = vector.load %arg7[%c0_58, %c0_59, %c3_60, %c0_61, %c0_62] : memref<3x1x4x8x8xbf16, #tpu.memory_space<vmem>>, vector<1x1x1x8x8xbf16>
    %68 = vector.shape_cast %67 : vector<1x1x1x8x8xbf16> to vector<8x8xbf16>
    %69 = vector.shape_cast %66 : vector<8x8xbf16> to vector<1x1x1x8x8xbf16>
    tpu.vector_store %arg7[%c0_58, %c0_59, %c3_60, %c0_61, %c0_62], %69 {strides = array<i32>} : memref<3x1x4x8x8xbf16, #tpu.memory_space<vmem>>, vector<1x1x1x8x8xbf16>,
    %c1_63 = arith.constant 1 : index
    %c0_64 = arith.constant 0 : index
    %c0_65 = arith.constant 0 : index
    %c0_66 = arith.constant 0 : index
    %70 = vector.load %arg5[%c1_63, %c0_64, %c0_65, %c0_66] : memref<3x4x32x8xbf16, #tpu.memory_space<vmem>>, vector<1x1x32x8xbf16>
    %71 = vector.shape_cast %70 : vector<1x1x32x8xbf16> to vector<32x8xbf16>
    %cst_67 = arith.constant dense<0.000000e+00> : vector<8x8xf32>
    %72 = tpu.matmul %25, %71, %cst_67 {dimension_numbers = #tpu.dot_dimension_numbers<[1], [0], [0], [1], [0, 0, 1, 1], [], []>} : vector<8x32xbf16>, vector<32x8xbf16>, vector<8x8xf32> -> vector<8x8xf32>
    %c1_68 = arith.constant 1 : index
    %c0_69 = arith.constant 0 : index
    %c0_70 = arith.constant 0 : index
    %c0_71 = arith.constant 0 : index
    %73 = vector.load %arg6[%c1_68, %c0_69, %c0_70, %c0_71] : memref<3x4x1x8xf32, #tpu.memory_space<vmem>>, vector<1x1x1x8xf32>
    %74 = vector.shape_cast %73 : vector<1x1x1x8xf32> to vector<1x8xf32>
    %75 = vector.broadcast %74 : vector<1x8xf32> to vector<8x8xf32>
    %76 = arith.addf %72, %75 : vector<8x8xf32>
    %77 = arith.truncf %76 : vector<8x8xf32> to vector<8x8xbf16>
    %c1_72 = arith.constant 1 : index
    %c0_73 = arith.constant 0 : index
    %c0_74 = arith.constant 0 : index
    %c0_75 = arith.constant 0 : index
    %c0_76 = arith.constant 0 : index
    %78 = vector.load %arg7[%c1_72, %c0_73, %c0_74, %c0_75, %c0_76] : memref<3x1x4x8x8xbf16, #tpu.memory_space<vmem>>, vector<1x1x1x8x8xbf16>
    %79 = vector.shape_cast %78 : vector<1x1x1x8x8xbf16> to vector<8x8xbf16>
    %80 = vector.shape_cast %77 : vector<8x8xbf16> to vector<1x1x1x8x8xbf16>
    tpu.vector_store %arg7[%c1_72, %c0_73, %c0_74, %c0_75, %c0_76], %80 {strides = array<i32>} : memref<3x1x4x8x8xbf16, #tpu.memory_space<vmem>>, vector<1x1x1x8x8xbf16>,
    %c1_77 = arith.constant 1 : index
    %c1_78 = arith.constant 1 : index
    %c0_79 = arith.constant 0 : index
    %c0_80 = arith.constant 0 : index
    %81 = vector.load %arg5[%c1_77, %c1_78, %c0_79, %c0_80] : memref<3x4x32x8xbf16, #tpu.memory_space<vmem>>, vector<1x1x32x8xbf16>
    %82 = vector.shape_cast %81 : vector<1x1x32x8xbf16> to vector<32x8xbf16>
    %cst_81 = arith.constant dense<0.000000e+00> : vector<8x8xf32>
    %83 = tpu.matmul %25, %82, %cst_81 {dimension_numbers = #tpu.dot_dimension_numbers<[1], [0], [0], [1], [0, 0, 1, 1], [], []>} : vector<8x32xbf16>, vector<32x8xbf16>, vector<8x8xf32> -> vector<8x8xf32>
    %c1_82 = arith.constant 1 : index
    %c1_83 = arith.constant 1 : index
    %c0_84 = arith.constant 0 : index
    %c0_85 = arith.constant 0 : index
    %84 = vector.load %arg6[%c1_82, %c1_83, %c0_84, %c0_85] : memref<3x4x1x8xf32, #tpu.memory_space<vmem>>, vector<1x1x1x8xf32>
    %85 = vector.shape_cast %84 : vector<1x1x1x8xf32> to vector<1x8xf32>
    %86 = vector.broadcast %85 : vector<1x8xf32> to vector<8x8xf32>
    %87 = arith.addf %83, %86 : vector<8x8xf32>
    %88 = arith.truncf %87 : vector<8x8xf32> to vector<8x8xbf16>
    %c1_86 = arith.constant 1 : index
    %c0_87 = arith.constant 0 : index
    %c1_88 = arith.constant 1 : index
    %c0_89 = arith.constant 0 : index
    %c0_90 = arith.constant 0 : index
    %89 = vector.load %arg7[%c1_86, %c0_87, %c1_88, %c0_89, %c0_90] : memref<3x1x4x8x8xbf16, #tpu.memory_space<vmem>>, vector<1x1x1x8x8xbf16>
    %90 = vector.shape_cast %89 : vector<1x1x1x8x8xbf16> to vector<8x8xbf16>
    %91 = vector.shape_cast %88 : vector<8x8xbf16> to vector<1x1x1x8x8xbf16>
    tpu.vector_store %arg7[%c1_86, %c0_87, %c1_88, %c0_89, %c0_90], %91 {strides = array<i32>} : memref<3x1x4x8x8xbf16, #tpu.memory_space<vmem>>, vector<1x1x1x8x8xbf16>,
    %c1_91 = arith.constant 1 : index
    %c2_92 = arith.constant 2 : index
    %c0_93 = arith.constant 0 : index
    %c0_94 = arith.constant 0 : index
    %92 = vector.load %arg5[%c1_91, %c2_92, %c0_93, %c0_94] : memref<3x4x32x8xbf16, #tpu.memory_space<vmem>>, vector<1x1x32x8xbf16>
    %93 = vector.shape_cast %92 : vector<1x1x32x8xbf16> to vector<32x8xbf16>
    %cst_95 = arith.constant dense<0.000000e+00> : vector<8x8xf32>
    %94 = tpu.matmul %25, %93, %cst_95 {dimension_numbers = #tpu.dot_dimension_numbers<[1], [0], [0], [1], [0, 0, 1, 1], [], []>} : vector<8x32xbf16>, vector<32x8xbf16>, vector<8x8xf32> -> vector<8x8xf32>
    %c1_96 = arith.constant 1 : index
    %c2_97 = arith.constant 2 : index
    %c0_98 = arith.constant 0 : index
    %c0_99 = arith.constant 0 : index
    %95 = vector.load %arg6[%c1_96, %c2_97, %c0_98, %c0_99] : memref<3x4x1x8xf32, #tpu.memory_space<vmem>>, vector<1x1x1x8xf32>
    %96 = vector.shape_cast %95 : vector<1x1x1x8xf32> to vector<1x8xf32>
    %97 = vector.broadcast %96 : vector<1x8xf32> to vector<8x8xf32>
    %98 = arith.addf %94, %97 : vector<8x8xf32>
    %99 = arith.truncf %98 : vector<8x8xf32> to vector<8x8xbf16>
    %c1_100 = arith.constant 1 : index
    %c0_101 = arith.constant 0 : index
    %c2_102 = arith.constant 2 : index
    %c0_103 = arith.constant 0 : index
    %c0_104 = arith.constant 0 : index
    %100 = vector.load %arg7[%c1_100, %c0_101, %c2_102, %c0_103, %c0_104] : memref<3x1x4x8x8xbf16, #tpu.memory_space<vmem>>, vector<1x1x1x8x8xbf16>
    %101 = vector.shape_cast %100 : vector<1x1x1x8x8xbf16> to vector<8x8xbf16>
    %102 = vector.shape_cast %99 : vector<8x8xbf16> to vector<1x1x1x8x8xbf16>
    tpu.vector_store %arg7[%c1_100, %c0_101, %c2_102, %c0_103, %c0_104], %102 {strides = array<i32>} : memref<3x1x4x8x8xbf16, #tpu.memory_space<vmem>>, vector<1x1x1x8x8xbf16>,
    %c1_105 = arith.constant 1 : index
    %c3_106 = arith.constant 3 : index
    %c0_107 = arith.constant 0 : index
    %c0_108 = arith.constant 0 : index
    %103 = vector.load %arg5[%c1_105, %c3_106, %c0_107, %c0_108] : memref<3x4x32x8xbf16, #tpu.memory_space<vmem>>, vector<1x1x32x8xbf16>
    %104 = vector.shape_cast %103 : vector<1x1x32x8xbf16> to vector<32x8xbf16>
    %cst_109 = arith.constant dense<0.000000e+00> : vector<8x8xf32>
    %105 = tpu.matmul %25, %104, %cst_109 {dimension_numbers = #tpu.dot_dimension_numbers<[1], [0], [0], [1], [0, 0, 1, 1], [], []>} : vector<8x32xbf16>, vector<32x8xbf16>, vector<8x8xf32> -> vector<8x8xf32>
    %c1_110 = arith.constant 1 : index
    %c3_111 = arith.constant 3 : index
    %c0_112 = arith.constant 0 : index
    %c0_113 = arith.constant 0 : index
    %106 = vector.load %arg6[%c1_110, %c3_111, %c0_112, %c0_113] : memref<3x4x1x8xf32, #tpu.memory_space<vmem>>, vector<1x1x1x8xf32>
    %107 = vector.shape_cast %106 : vector<1x1x1x8xf32> to vector<1x8xf32>
    %108 = vector.broadcast %107 : vector<1x8xf32> to vector<8x8xf32>
    %109 = arith.addf %105, %108 : vector<8x8xf32>
    %110 = arith.truncf %109 : vector<8x8xf32> to vector<8x8xbf16>
    %c1_114 = arith.constant 1 : index
    %c0_115 = arith.constant 0 : index
    %c3_116 = arith.constant 3 : index
    %c0_117 = arith.constant 0 : index
    %c0_118 = arith.constant 0 : index
    %111 = vector.load %arg7[%c1_114, %c0_115, %c3_116, %c0_117, %c0_118] : memref<3x1x4x8x8xbf16, #tpu.memory_space<vmem>>, vector<1x1x1x8x8xbf16>
    %112 = vector.shape_cast %111 : vector<1x1x1x8x8xbf16> to vector<8x8xbf16>
    %113 = vector.shape_cast %110 : vector<8x8xbf16> to vector<1x1x1x8x8xbf16>
    tpu.vector_store %arg7[%c1_114, %c0_115, %c3_116, %c0_117, %c0_118], %113 {strides = array<i32>} : memref<3x1x4x8x8xbf16, #tpu.memory_space<vmem>>, vector<1x1x1x8x8xbf16>,
    %c2_119 = arith.constant 2 : index
    %c0_120 = arith.constant 0 : index
    %c0_121 = arith.constant 0 : index
    %c0_122 = arith.constant 0 : index
    %114 = vector.load %arg5[%c2_119, %c0_120, %c0_121, %c0_122] : memref<3x4x32x8xbf16, #tpu.memory_space<vmem>>, vector<1x1x32x8xbf16>
    %115 = vector.shape_cast %114 : vector<1x1x32x8xbf16> to vector<32x8xbf16>
    %cst_123 = arith.constant dense<0.000000e+00> : vector<8x8xf32>
    %116 = tpu.matmul %25, %115, %cst_123 {dimension_numbers = #tpu.dot_dimension_numbers<[1], [0], [0], [1], [0, 0, 1, 1], [], []>} : vector<8x32xbf16>, vector<32x8xbf16>, vector<8x8xf32> -> vector<8x8xf32>
    %c2_124 = arith.constant 2 : index
    %c0_125 = arith.constant 0 : index
    %c0_126 = arith.constant 0 : index
    %c0_127 = arith.constant 0 : index
    %117 = vector.load %arg6[%c2_124, %c0_125, %c0_126, %c0_127] : memref<3x4x1x8xf32, #tpu.memory_space<vmem>>, vector<1x1x1x8xf32>
    %118 = vector.shape_cast %117 : vector<1x1x1x8xf32> to vector<1x8xf32>
    %119 = vector.broadcast %118 : vector<1x8xf32> to vector<8x8xf32>
    %120 = arith.addf %116, %119 : vector<8x8xf32>
    %121 = arith.truncf %120 : vector<8x8xf32> to vector<8x8xbf16>
    %c2_128 = arith.constant 2 : index
    %c0_129 = arith.constant 0 : index
    %c0_130 = arith.constant 0 : index
    %c0_131 = arith.constant 0 : index
    %c0_132 = arith.constant 0 : index
    %122 = vector.load %arg7[%c2_128, %c0_129, %c0_130, %c0_131, %c0_132] : memref<3x1x4x8x8xbf16, #tpu.memory_space<vmem>>, vector<1x1x1x8x8xbf16>
    %123 = vector.shape_cast %122 : vector<1x1x1x8x8xbf16> to vector<8x8xbf16>
    %124 = vector.shape_cast %121 : vector<8x8xbf16> to vector<1x1x1x8x8xbf16>
    tpu.vector_store %arg7[%c2_128, %c0_129, %c0_130, %c0_131, %c0_132], %124 {strides = array<i32>} : memref<3x1x4x8x8xbf16, #tpu.memory_space<vmem>>, vector<1x1x1x8x8xbf16>,
    %c2_133 = arith.constant 2 : index
    %c1_134 = arith.constant 1 : index
    %c0_135 = arith.constant 0 : index
    %c0_136 = arith.constant 0 : index
    %125 = vector.load %arg5[%c2_133, %c1_134, %c0_135, %c0_136] : memref<3x4x32x8xbf16, #tpu.memory_space<vmem>>, vector<1x1x32x8xbf16>
    %126 = vector.shape_cast %125 : vector<1x1x32x8xbf16> to vector<32x8xbf16>
    %cst_137 = arith.constant dense<0.000000e+00> : vector<8x8xf32>
    %127 = tpu.matmul %25, %126, %cst_137 {dimension_numbers = #tpu.dot_dimension_numbers<[1], [0], [0], [1], [0, 0, 1, 1], [], []>} : vector<8x32xbf16>, vector<32x8xbf16>, vector<8x8xf32> -> vector<8x8xf32>
    %c2_138 = arith.constant 2 : index
    %c1_139 = arith.constant 1 : index
    %c0_140 = arith.constant 0 : index
    %c0_141 = arith.constant 0 : index
    %128 = vector.load %arg6[%c2_138, %c1_139, %c0_140, %c0_141] : memref<3x4x1x8xf32, #tpu.memory_space<vmem>>, vector<1x1x1x8xf32>
    %129 = vector.shape_cast %128 : vector<1x1x1x8xf32> to vector<1x8xf32>
    %130 = vector.broadcast %129 : vector<1x8xf32> to vector<8x8xf32>
    %131 = arith.addf %127, %130 : vector<8x8xf32>
    %132 = arith.truncf %131 : vector<8x8xf32> to vector<8x8xbf16>
    %c2_142 = arith.constant 2 : index
    %c0_143 = arith.constant 0 : index
    %c1_144 = arith.constant 1 : index
    %c0_145 = arith.constant 0 : index
    %c0_146 = arith.constant 0 : index
    %133 = vector.load %arg7[%c2_142, %c0_143, %c1_144, %c0_145, %c0_146] : memref<3x1x4x8x8xbf16, #tpu.memory_space<vmem>>, vector<1x1x1x8x8xbf16>
    %134 = vector.shape_cast %133 : vector<1x1x1x8x8xbf16> to vector<8x8xbf16>
    %135 = vector.shape_cast %132 : vector<8x8xbf16> to vector<1x1x1x8x8xbf16>
    tpu.vector_store %arg7[%c2_142, %c0_143, %c1_144, %c0_145, %c0_146], %135 {strides = array<i32>} : memref<3x1x4x8x8xbf16, #tpu.memory_space<vmem>>, vector<1x1x1x8x8xbf16>,
    %c2_147 = arith.constant 2 : index
    %c2_148 = arith.constant 2 : index
    %c0_149 = arith.constant 0 : index
    %c0_150 = arith.constant 0 : index
    %136 = vector.load %arg5[%c2_147, %c2_148, %c0_149, %c0_150] : memref<3x4x32x8xbf16, #tpu.memory_space<vmem>>, vector<1x1x32x8xbf16>
    %137 = vector.shape_cast %136 : vector<1x1x32x8xbf16> to vector<32x8xbf16>
    %cst_151 = arith.constant dense<0.000000e+00> : vector<8x8xf32>
    %138 = tpu.matmul %25, %137, %cst_151 {dimension_numbers = #tpu.dot_dimension_numbers<[1], [0], [0], [1], [0, 0, 1, 1], [], []>} : vector<8x32xbf16>, vector<32x8xbf16>, vector<8x8xf32> -> vector<8x8xf32>
    %c2_152 = arith.constant 2 : index
    %c2_153 = arith.constant 2 : index
    %c0_154 = arith.constant 0 : index
    %c0_155 = arith.constant 0 : index
    %139 = vector.load %arg6[%c2_152, %c2_153, %c0_154, %c0_155] : memref<3x4x1x8xf32, #tpu.memory_space<vmem>>, vector<1x1x1x8xf32>
    %140 = vector.shape_cast %139 : vector<1x1x1x8xf32> to vector<1x8xf32>
    %141 = vector.broadcast %140 : vector<1x8xf32> to vector<8x8xf32>
    %142 = arith.addf %138, %141 : vector<8x8xf32>
    %143 = arith.truncf %142 : vector<8x8xf32> to vector<8x8xbf16>
    %c2_156 = arith.constant 2 : index
    %c0_157 = arith.constant 0 : index
    %c2_158 = arith.constant 2 : index
    %c0_159 = arith.constant 0 : index
    %c0_160 = arith.constant 0 : index
    %144 = vector.load %arg7[%c2_156, %c0_157, %c2_158, %c0_159, %c0_160] : memref<3x1x4x8x8xbf16, #tpu.memory_space<vmem>>, vector<1x1x1x8x8xbf16>
    %145 = vector.shape_cast %144 : vector<1x1x1x8x8xbf16> to vector<8x8xbf16>
    %146 = vector.shape_cast %143 : vector<8x8xbf16> to vector<1x1x1x8x8xbf16>
    tpu.vector_store %arg7[%c2_156, %c0_157, %c2_158, %c0_159, %c0_160], %146 {strides = array<i32>} : memref<3x1x4x8x8xbf16, #tpu.memory_space<vmem>>, vector<1x1x1x8x8xbf16>,
    %c2_161 = arith.constant 2 : index
    %c3_162 = arith.constant 3 : index
    %c0_163 = arith.constant 0 : index
    %c0_164 = arith.constant 0 : index
    %147 = vector.load %arg5[%c2_161, %c3_162, %c0_163, %c0_164] : memref<3x4x32x8xbf16, #tpu.memory_space<vmem>>, vector<1x1x32x8xbf16>
    %148 = vector.shape_cast %147 : vector<1x1x32x8xbf16> to vector<32x8xbf16>
    %cst_165 = arith.constant dense<0.000000e+00> : vector<8x8xf32>
    %149 = tpu.matmul %25, %148, %cst_165 {dimension_numbers = #tpu.dot_dimension_numbers<[1], [0], [0], [1], [0, 0, 1, 1], [], []>} : vector<8x32xbf16>, vector<32x8xbf16>, vector<8x8xf32> -> vector<8x8xf32>
    %c2_166 = arith.constant 2 : index
    %c3_167 = arith.constant 3 : index
    %c0_168 = arith.constant 0 : index
    %c0_169 = arith.constant 0 : index
    %150 = vector.load %arg6[%c2_166, %c3_167, %c0_168, %c0_169] : memref<3x4x1x8xf32, #tpu.memory_space<vmem>>, vector<1x1x1x8xf32>
    %151 = vector.shape_cast %150 : vector<1x1x1x8xf32> to vector<1x8xf32>
    %152 = vector.broadcast %151 : vector<1x8xf32> to vector<8x8xf32>
    %153 = arith.addf %149, %152 : vector<8x8xf32>
    %154 = arith.truncf %153 : vector<8x8xf32> to vector<8x8xbf16>
    %c2_170 = arith.constant 2 : index
    %c0_171 = arith.constant 0 : index
    %c3_172 = arith.constant 3 : index
    %c0_173 = arith.constant 0 : index
    %c0_174 = arith.constant 0 : index
    %155 = vector.load %arg7[%c2_170, %c0_171, %c3_172, %c0_173, %c0_174] : memref<3x1x4x8x8xbf16, #tpu.memory_space<vmem>>, vector<1x1x1x8x8xbf16>
    %156 = vector.shape_cast %155 : vector<1x1x1x8x8xbf16> to vector<8x8xbf16>
    %157 = vector.shape_cast %154 : vector<8x8xbf16> to vector<1x1x1x8x8xbf16>
    tpu.vector_store %arg7[%c2_170, %c0_171, %c3_172, %c0_173, %c0_174], %157 {strides = array<i32>} : memref<3x1x4x8x8xbf16, #tpu.memory_space<vmem>>, vector<1x1x1x8x8xbf16>,
    return
  }
  func.func @transform_0(%arg0: i32, %arg1: i32) -> (i32, i32, i32) {
    %c0_i32 = arith.constant 0 : i32
    %c0_i32_0 = arith.constant 0 : i32
    return %arg0, %arg1, %c0_i32 : i32, i32, i32
  }
  func.func @transform_1(%arg0: i32, %arg1: i32) -> (i32, i32) {
    %c0_i32 = arith.constant 0 : i32
    %c0_i32_0 = arith.constant 0 : i32
    %c0_i32_1 = arith.constant 0 : i32
    return %c0_i32, %c0_i32_0 : i32, i32
  }
  func.func @transform_2(%arg0: i32, %arg1: i32) -> (i32, i32) {
    %c0_i32 = arith.constant 0 : i32
    %c0_i32_0 = arith.constant 0 : i32
    %c0_i32_1 = arith.constant 0 : i32
    return %c0_i32, %c0_i32_0 : i32, i32
  }
  func.func @transform_3(%arg0: i32, %arg1: i32) -> (i32, i32, i32, i32) {
    %c0_i32 = arith.constant 0 : i32
    %c0_i32_0 = arith.constant 0 : i32
    %c0_i32_1 = arith.constant 0 : i32
    %c0_i32_2 = arith.constant 0 : i32
    %c0_i32_3 = arith.constant 0 : i32
    return %c0_i32, %c0_i32_0, %c0_i32_1, %c0_i32_2 : i32, i32, i32, i32
  }
  func.func @transform_4(%arg0: i32, %arg1: i32) -> (i32, i32, i32, i32) {
    %c0_i32 = arith.constant 0 : i32
    %c0_i32_0 = arith.constant 0 : i32
    %c0_i32_1 = arith.constant 0 : i32
    %c0_i32_2 = arith.constant 0 : i32
    %c0_i32_3 = arith.constant 0 : i32
    return %c0_i32, %c0_i32_0, %c0_i32_1, %c0_i32_2 : i32, i32, i32, i32
  }
  func.func @transform_5(%arg0: i32, %arg1: i32) -> (i32, i32, i32, i32, i32) {
    %c0_i32 = arith.constant 0 : i32
    %c0_i32_0 = arith.constant 0 : i32
    %c0_i32_1 = arith.constant 0 : i32
    %c0_i32_2 = arith.constant 0 : i32
    return %c0_i32, %arg0, %c0_i32_0, %arg1, %c0_i32_1 : i32, i32, i32, i32, i32
  }
}

module attributes {stable_mosaic.version = 11 : i64} {
  func.func @_ffn_kernel(%arg0: i32, %arg1: i32, %arg2: memref<1x8x32xf32, #tpu.memory_space<vmem>>, %arg3: memref<1x32xf32, #tpu.memory_space<vmem>>, %arg4: memref<1x32xf32, #tpu.memory_space<vmem>>, %arg5: memref<32x64xbf16, #tpu.memory_space<vmem>>, %arg6: memref<1x64xf32, #tpu.memory_space<vmem>>, %arg7: memref<64x32xbf16, #tpu.memory_space<vmem>>, %arg8: memref<1x32xf32, #tpu.memory_space<vmem>>, %arg9: memref<1x8x32xf32, #tpu.memory_space<vmem>>) attributes {dimension_semantics = [#tpu.dimension_semantics<parallel>, #tpu.dimension_semantics<parallel>], iteration_bounds = array<i64: 2, 1>, scalar_prefetch = 0 : i64, scratch_operands = 0 : i64, tpu.core_type = #tpu.core_type<tc>, window_params = [{transform_indices = @transform_0, window_bounds = array<i64: 1, 8, 32>}, {pipeline_mode = #tpu.pipeline_mode<synchronous>, transform_indices = @transform_1, window_bounds = array<i64: 1, 32>}, {pipeline_mode = #tpu.pipeline_mode<synchronous>, transform_indices = @transform_2, window_bounds = array<i64: 1, 32>}, {pipeline_mode = #tpu.pipeline_mode<synchronous>, transform_indices = @transform_3, window_bounds = array<i64: 32, 64>}, {pipeline_mode = #tpu.pipeline_mode<synchronous>, transform_indices = @transform_4, window_bounds = array<i64: 1, 64>}, {pipeline_mode = #tpu.pipeline_mode<synchronous>, transform_indices = @transform_5, window_bounds = array<i64: 64, 32>}, {pipeline_mode = #tpu.pipeline_mode<synchronous>, transform_indices = @transform_6, window_bounds = array<i64: 1, 32>}, {transform_indices = @transform_7, window_bounds = array<i64: 1, 8, 32>}]} {
    %c0 = arith.constant 0 : index
    %c0_0 = arith.constant 0 : index
    %c0_1 = arith.constant 0 : index
    %0 = vector.load %arg2[%c0, %c0_0, %c0_1] : memref<1x8x32xf32, #tpu.memory_space<vmem>>, vector<1x8x32xf32>
    %1 = vector.shape_cast %0 : vector<1x8x32xf32> to vector<8x32xf32>
    %c0_2 = arith.constant 0 : index
    %c0_3 = arith.constant 0 : index
    %2 = vector.load %arg3[%c0_2, %c0_3] : memref<1x32xf32, #tpu.memory_space<vmem>>, vector<1x32xf32>
    %c0_4 = arith.constant 0 : index
    %c0_5 = arith.constant 0 : index
    %3 = vector.load %arg4[%c0_4, %c0_5] : memref<1x32xf32, #tpu.memory_space<vmem>>, vector<1x32xf32>
    %cst = arith.constant dense<0.000000e+00> : vector<8xf32>
    %4 = vector.multi_reduction <add>, %1, %cst [1] : vector<8x32xf32> to vector<8xf32>
    %5 = vector.shape_cast %4 : vector<8xf32> to vector<8x1xf32>
    %cst_6 = arith.constant 3.200000e+01 : f32
    %6 = vector.broadcast %cst_6 : f32 to vector<8x1xf32>
    %7 = arith.divf %5, %6 : vector<8x1xf32>
    %8 = vector.broadcast %7 : vector<8x1xf32> to vector<8x32xf32>
    %9 = arith.subf %1, %8 : vector<8x32xf32>
    %10 = arith.mulf %9, %9 : vector<8x32xf32>
    %cst_7 = arith.constant dense<0.000000e+00> : vector<8xf32>
    %11 = vector.multi_reduction <add>, %10, %cst_7 [1] : vector<8x32xf32> to vector<8xf32>
    %12 = vector.shape_cast %11 : vector<8xf32> to vector<8x1xf32>
    %cst_8 = arith.constant 0.0322580636 : f32
    %13 = vector.broadcast %cst_8 : f32 to vector<8x1xf32>
    %14 = arith.mulf %12, %13 : vector<8x1xf32>
    %15 = math.sqrt %14 : vector<8x1xf32>
    %cst_9 = arith.constant 9.99999997E-7 : f32
    %16 = vector.broadcast %cst_9 : f32 to vector<8x1xf32>
    %17 = arith.addf %15, %16 : vector<8x1xf32>
    %18 = tpu.reciprocal %17 {approx = true} : vector<8x1xf32> -> vector<8x1xf32>
    %19 = vector.broadcast %18 : vector<8x1xf32> to vector<8x32xf32>
    %20 = arith.mulf %9, %19 : vector<8x32xf32>
    %21 = vector.broadcast %2 : vector<1x32xf32> to vector<8x32xf32>
    %22 = arith.mulf %21, %20 : vector<8x32xf32>
    %23 = vector.broadcast %3 : vector<1x32xf32> to vector<8x32xf32>
    %24 = arith.addf %22, %23 : vector<8x32xf32>
    %25 = arith.truncf %24 : vector<8x32xf32> to vector<8x32xbf16>
    %c0_10 = arith.constant 0 : index
    %c0_11 = arith.constant 0 : index
    %26 = vector.load %arg5[%c0_10, %c0_11] : memref<32x64xbf16, #tpu.memory_space<vmem>>, vector<32x64xbf16>
    %cst_12 = arith.constant dense<0.000000e+00> : vector<8x64xf32>
    %27 = tpu.matmul %25, %26, %cst_12 {dimension_numbers = #tpu.dot_dimension_numbers<[1], [0], [0], [1], [0, 0, 1, 1], [], []>} : vector<8x32xbf16>, vector<32x64xbf16>, vector<8x64xf32> -> vector<8x64xf32>
    %c0_13 = arith.constant 0 : index
    %c0_14 = arith.constant 0 : index
    %28 = vector.load %arg6[%c0_13, %c0_14] : memref<1x64xf32, #tpu.memory_space<vmem>>, vector<1x64xf32>
    %29 = vector.broadcast %28 : vector<1x64xf32> to vector<8x64xf32>
    %30 = arith.addf %27, %29 : vector<8x64xf32>
    %cst_15 = arith.constant 0.000000e+00 : f32
    %31 = vector.broadcast %cst_15 : f32 to vector<8x64xf32>
    %32 = arith.maximumf %30, %31 : vector<8x64xf32>
    %33 = arith.truncf %32 : vector<8x64xf32> to vector<8x64xbf16>
    %c0_16 = arith.constant 0 : index
    %c0_17 = arith.constant 0 : index
    %34 = vector.load %arg7[%c0_16, %c0_17] : memref<64x32xbf16, #tpu.memory_space<vmem>>, vector<64x32xbf16>
    %cst_18 = arith.constant dense<0.000000e+00> : vector<8x32xf32>
    %35 = tpu.matmul %33, %34, %cst_18 {dimension_numbers = #tpu.dot_dimension_numbers<[1], [0], [0], [1], [0, 0, 1, 1], [], []>} : vector<8x64xbf16>, vector<64x32xbf16>, vector<8x32xf32> -> vector<8x32xf32>
    %c0_19 = arith.constant 0 : index
    %c0_20 = arith.constant 0 : index
    %36 = vector.load %arg8[%c0_19, %c0_20] : memref<1x32xf32, #tpu.memory_space<vmem>>, vector<1x32xf32>
    %37 = vector.broadcast %36 : vector<1x32xf32> to vector<8x32xf32>
    %38 = arith.addf %35, %37 : vector<8x32xf32>
    %39 = arith.addf %38, %1 : vector<8x32xf32>
    %c0_21 = arith.constant 0 : index
    %c0_22 = arith.constant 0 : index
    %c0_23 = arith.constant 0 : index
    %40 = vector.load %arg9[%c0_21, %c0_22, %c0_23] : memref<1x8x32xf32, #tpu.memory_space<vmem>>, vector<1x8x32xf32>
    %41 = vector.shape_cast %40 : vector<1x8x32xf32> to vector<8x32xf32>
    %42 = vector.shape_cast %39 : vector<8x32xf32> to vector<1x8x32xf32>
    tpu.vector_store %arg9[%c0_21, %c0_22, %c0_23], %42 {strides = array<i32>} : memref<1x8x32xf32, #tpu.memory_space<vmem>>, vector<1x8x32xf32>,
    return
  }
  func.func @transform_0(%arg0: i32, %arg1: i32) -> (i32, i32, i32) {
    %c0_i32 = arith.constant 0 : i32
    %c0_i32_0 = arith.constant 0 : i32
    return %arg0, %arg1, %c0_i32 : i32, i32, i32
  }
  func.func @transform_1(%arg0: i32, %arg1: i32) -> (i32, i32) {
    %c0_i32 = arith.constant 0 : i32
    %c0_i32_0 = arith.constant 0 : i32
    %c0_i32_1 = arith.constant 0 : i32
    return %c0_i32, %c0_i32_0 : i32, i32
  }
  func.func @transform_2(%arg0: i32, %arg1: i32) -> (i32, i32) {
    %c0_i32 = arith.constant 0 : i32
    %c0_i32_0 = arith.constant 0 : i32
    %c0_i32_1 = arith.constant 0 : i32
    return %c0_i32, %c0_i32_0 : i32, i32
  }
  func.func @transform_3(%arg0: i32, %arg1: i32) -> (i32, i32) {
    %c0_i32 = arith.constant 0 : i32
    %c0_i32_0 = arith.constant 0 : i32
    %c0_i32_1 = arith.constant 0 : i32
    return %c0_i32, %c0_i32_0 : i32, i32
  }
  func.func @transform_4(%arg0: i32, %arg1: i32) -> (i32, i32) {
    %c0_i32 = arith.constant 0 : i32
    %c0_i32_0 = arith.constant 0 : i32
    %c0_i32_1 = arith.constant 0 : i32
    return %c0_i32, %c0_i32_0 : i32, i32
  }
  func.func @transform_5(%arg0: i32, %arg1: i32) -> (i32, i32) {
    %c0_i32 = arith.constant 0 : i32
    %c0_i32_0 = arith.constant 0 : i32
    %c0_i32_1 = arith.constant 0 : i32
    return %c0_i32, %c0_i32_0 : i32, i32
  }
  func.func @transform_6(%arg0: i32, %arg1: i32) -> (i32, i32) {
    %c0_i32 = arith.constant 0 : i32
    %c0_i32_0 = arith.constant 0 : i32
    %c0_i32_1 = arith.constant 0 : i32
    return %c0_i32, %c0_i32_0 : i32, i32
  }
  func.func @transform_7(%arg0: i32, %arg1: i32) -> (i32, i32, i32) {
    %c0_i32 = arith.constant 0 : i32
    %c0_i32_0 = arith.constant 0 : i32
    return %arg0, %arg1, %c0_i32 : i32, i32, i32
  }
}

module attributes {stable_mosaic.version = 11 : i64} {
  func.func @_layernorm_kernel(%arg0: i32, %arg1: i32, %arg2: memref<1x8x32xf32, #tpu.memory_space<vmem>>, %arg3: memref<1x32xf32, #tpu.memory_space<vmem>>, %arg4: memref<1x32xf32, #tpu.memory_space<vmem>>, %arg5: memref<1x8x32xf32, #tpu.memory_space<vmem>>) attributes {dimension_semantics = [#tpu.dimension_semantics<parallel>, #tpu.dimension_semantics<parallel>], iteration_bounds = array<i64: 2, 1>, scalar_prefetch = 0 : i64, scratch_operands = 0 : i64, tpu.core_type = #tpu.core_type<tc>, window_params = [{transform_indices = @transform_0, window_bounds = array<i64: 1, 8, 32>}, {pipeline_mode = #tpu.pipeline_mode<synchronous>, transform_indices = @transform_1, window_bounds = array<i64: 1, 32>}, {pipeline_mode = #tpu.pipeline_mode<synchronous>, transform_indices = @transform_2, window_bounds = array<i64: 1, 32>}, {transform_indices = @transform_3, window_bounds = array<i64: 1, 8, 32>}]} {
    %c0 = arith.constant 0 : index
    %c0_0 = arith.constant 0 : index
    %c0_1 = arith.constant 0 : index
    %0 = vector.load %arg2[%c0, %c0_0, %c0_1] : memref<1x8x32xf32, #tpu.memory_space<vmem>>, vector<1x8x32xf32>
    %1 = vector.shape_cast %0 : vector<1x8x32xf32> to vector<8x32xf32>
    %c0_2 = arith.constant 0 : index
    %c0_3 = arith.constant 0 : index
    %2 = vector.load %arg3[%c0_2, %c0_3] : memref<1x32xf32, #tpu.memory_space<vmem>>, vector<1x32xf32>
    %c0_4 = arith.constant 0 : index
    %c0_5 = arith.constant 0 : index
    %3 = vector.load %arg4[%c0_4, %c0_5] : memref<1x32xf32, #tpu.memory_space<vmem>>, vector<1x32xf32>
    %cst = arith.constant dense<0.000000e+00> : vector<8xf32>
    %4 = vector.multi_reduction <add>, %1, %cst [1] : vector<8x32xf32> to vector<8xf32>
    %5 = vector.shape_cast %4 : vector<8xf32> to vector<8x1xf32>
    %cst_6 = arith.constant 3.200000e+01 : f32
    %6 = vector.broadcast %cst_6 : f32 to vector<8x1xf32>
    %7 = arith.divf %5, %6 : vector<8x1xf32>
    %8 = vector.broadcast %7 : vector<8x1xf32> to vector<8x32xf32>
    %9 = arith.subf %1, %8 : vector<8x32xf32>
    %10 = arith.mulf %9, %9 : vector<8x32xf32>
    %cst_7 = arith.constant dense<0.000000e+00> : vector<8xf32>
    %11 = vector.multi_reduction <add>, %10, %cst_7 [1] : vector<8x32xf32> to vector<8xf32>
    %12 = vector.shape_cast %11 : vector<8xf32> to vector<8x1xf32>
    %cst_8 = arith.constant 0.0322580636 : f32
    %13 = vector.broadcast %cst_8 : f32 to vector<8x1xf32>
    %14 = arith.mulf %12, %13 : vector<8x1xf32>
    %15 = math.sqrt %14 : vector<8x1xf32>
    %cst_9 = arith.constant 9.99999997E-7 : f32
    %16 = vector.broadcast %cst_9 : f32 to vector<8x1xf32>
    %17 = arith.addf %15, %16 : vector<8x1xf32>
    %18 = tpu.reciprocal %17 : vector<8x1xf32> -> vector<8x1xf32>
    %19 = vector.broadcast %18 : vector<8x1xf32> to vector<8x32xf32>
    %20 = arith.mulf %9, %19 : vector<8x32xf32>
    %21 = vector.broadcast %2 : vector<1x32xf32> to vector<8x32xf32>
    %22 = arith.mulf %21, %20 : vector<8x32xf32>
    %23 = vector.broadcast %3 : vector<1x32xf32> to vector<8x32xf32>
    %24 = arith.addf %22, %23 : vector<8x32xf32>
    %c0_10 = arith.constant 0 : index
    %c0_11 = arith.constant 0 : index
    %c0_12 = arith.constant 0 : index
    %25 = vector.load %arg5[%c0_10, %c0_11, %c0_12] : memref<1x8x32xf32, #tpu.memory_space<vmem>>, vector<1x8x32xf32>
    %26 = vector.shape_cast %25 : vector<1x8x32xf32> to vector<8x32xf32>
    %27 = vector.shape_cast %24 : vector<8x32xf32> to vector<1x8x32xf32>
    tpu.vector_store %arg5[%c0_10, %c0_11, %c0_12], %27 {strides = array<i32>} : memref<1x8x32xf32, #tpu.memory_space<vmem>>, vector<1x8x32xf32>,
    return
  }
  func.func @transform_0(%arg0: i32, %arg1: i32) -> (i32, i32, i32) {
    %c0_i32 = arith.constant 0 : i32
    %c0_i32_0 = arith.constant 0 : i32
    return %arg0, %arg1, %c0_i32 : i32, i32, i32
  }
  func.func @transform_1(%arg0: i32, %arg1: i32) -> (i32, i32) {
    %c0_i32 = arith.constant 0 : i32
    %c0_i32_0 = arith.constant 0 : i32
    %c0_i32_1 = arith.constant 0 : i32
    return %c0_i32, %c0_i32_0 : i32, i32
  }
  func.func @transform_2(%arg0: i32, %arg1: i32) -> (i32, i32) {
    %c0_i32 = arith.constant 0 : i32
    %c0_i32_0 = arith.constant 0 : i32
    %c0_i32_1 = arith.constant 0 : i32
    return %c0_i32, %c0_i32_0 : i32, i32
  }
  func.func @transform_3(%arg0: i32, %arg1: i32) -> (i32, i32, i32) {
    %c0_i32 = arith.constant 0 : i32
    %c0_i32_0 = arith.constant 0 : i32
    return %arg0, %arg1, %c0_i32 : i32, i32, i32
  }
}

</mosaic_0001>

<bundles_post_ra>
// kernel: encoder_forward.9
= control target key start
LH: loop header
LB: loop body
LE: loop exit
PB: predicated region body
PF: predicated region fallthrough
CT: control target
= control target key end

     0   :  { %s659_s24 = smov 0   ;;  %s661_s25 = smov 0   ;;  %s738_s0 = inlined_call_operand.vmem [shape: f32[2,8,32], index: 0, kind: input, shape index: {}, may-alias: {0,7}]   ;;  %s739_s1 = inlined_call_operand.vmem [shape: f32[1,32], index: 1, kind: input, shape index: {}]   ;;  %s740_s2 = inlined_call_operand.vmem [shape: f32[1,32], index: 2, kind: input, shape index: {}]   ;;  %s741_s3 = inlined_call_operand.vmem [shape: bf16[32,64], index: 3, kind: input, shape index: {}]   ;;  %s742_s4 = inlined_call_operand.vmem [shape: f32[1,64], index: 4, kind: input, shape index: {}]   ;;  %s743_s5 = inlined_call_operand.vmem [shape: bf16[64,32], index: 5, kind: input, shape index: {}]   ;;  %s744_s6 = inlined_call_operand.vmem [shape: f32[1,32], index: 6, kind: input, shape index: {}]   ;;  %s745_s7 = inlined_call_operand.vmem [shape: f32[2,8,32], index: 7, kind: output, shape index: {}, may-alias: {0,7}]  }
   0x1   :  { %s663_s26 = smov 0  }
   0x2 LB: > { %s29_s27 = sadd.s32 1, %s612_s25  ;;  %p522_p0 = scmp.ge.s32.totalorder %s616_s26, 1  ;;  %s616_s26 = sphi %s663_s26, %s17_s26   ;;  %s612_s25 = sphi %s661_s25, %s747_s25   ;;  %s608_s24 = sphi %s659_s24, %s746_s24  }
   0x3   : > { %p31_p1 = scmp.ge.s32.totalorder %s29_s27, 2  ;;  %p255_p2 = scmp.lt.s32.totalorder %s616_s26, 3 }
   0x5   : > { %s749_s27 = smov (%p31_p1, %s29_s27), 0  ;;  %p256_p3 = pnand %p522_p0, %p255_p2 }
   0x6   : > { %p291_p4 = scmp.lt.s32.totalorder (!%p256_p3), %s608_s24, 1 }
   0x7   : > { %259 = sbr.rel (%p256_p3) target bundleno = 562 (0x232), region = 48 }
   0xc   : > { %s751_s24 = smov (!%p291_p4, %s608_s24), 1  ;;  %vm309_vm0 = vcmask 261120   ;;  %v618_v2 = vmov 32.0   ;;  %v554_v14 = vld [vmem:[%s741_s3 + $0x8] sm:$0xff]  ;;  %v553_v15 = vld [vmem:[%s741_s3] sm:$0xff]  ;;  %v558_v19 = vld [vmem:[%s743_s5 + $0x18] sm:$0xff] }
   0xd   : > { %s523_s28 = sshll.u32 %s751_s24, 3  ;;  %588 = vrcp.f32 %v618_v2  ;;  %380 = vmatpush.bf16.msra.mxu0 %v554_v14  ;;  %433 = vmatpush.bf16.msra.mxu1 %v558_v19  ;;  %v557_v21 = vld [vmem:[%s743_s5 + $0x10] sm:$0xff]  ;;  %v584_v31 = vld [vmem:[%s739_s1] ss:$0 sm:$0xff]  ;;  %v556_v38 = vld [vmem:[%s743_s5 + $0x8] sm:$0xff]  ;;  %vm425_vm4 = vcmask 523264  }
   0xe   : > { %s297_s8 = scalar_lea.vmem %s738_s0, %s523_s28  ;;  %v585_v34 = vld [vmem:[%s740_s2] ss:$0 sm:$0xff]  ;;  %s304_s13 = scalar_lea.vmem %s745_s7, %s523_s28 }
   0xf   : > { %v685_v0 = vld [vmem:[%s297_s8] sm:$0xff] }
  0x10   : > { %v310_v1 = vsel %vm309_vm0, %v685_v0, 0.0  ;;  %v555_v39 = vld [vmem:[%s743_s5] sm:$0xff] }
  0x11   : > { %311 = vadd.xlane.f32.xlu0 %v310_v1  ;;  %381 = vmatpush.bf16.msra.mxu0 %v553_v15  ;;  %v586_v40 = vld [vmem:[%s742_s4] ss:$0 sm:$0xff] }
  0x12   : > { %434 = vmatpush.bf16.msra.mxu1 %v557_v21  ;;  %v587_v46 = vld [vmem:[%s744_s6] ss:$0 sm:$0xff] }
  0x13   : > { %v589_v3 = vpop.eup %588 }
  0x14   : > { %v314_v4 = vmul.f32 32.0, %v589_v3  ;;  %vm318_vm1 = vweird.f32 %v589_v3 }
  0x16   : > { %v315_v5 = vsub.f32 1.0, %v314_v4  ;;  %435 = vmatpush.bf16.msra.mxu1 %v556_v38 }
  0x18   : > { %v316_v6 = vmul.f32 %v589_v3, %v315_v5 }
  0x1a   : > { %v317_v7 = vadd.f32 %v589_v3, %v316_v6  ;;  %436 = vmatpush.bf16.msra.mxu1 %v555_v39 }
  0x1c   : > { %v319_v8 = vsel %vm318_vm1, %v589_v3, %v317_v7 }
  0x84   : > { %v312_v9 = vpop.xlane.xlu0 %311 }
  0x85   : > { %v320_v10 = vmul.f32 %v319_v8, %v312_v9 }
  0x87   : > { %v321_v11 = vsub.f32 %v685_v0, %v320_v10 }
  0x89   : > { %v322_v12 = vmul.f32 %v321_v11, %v321_v11 }
  0x8b   : > { %v323_v13 = vsel %vm309_vm0, %v322_v12, 0.0 }
  0x8c   : > { %324 = vadd.xlane.f32.xlu0 %v323_v13 }
  0xff   : > { %v325_v16 = vpop.xlane.xlu0 %324 }
 0x100   : > { %v326_v17 = vmul.f32 0.032258064, %v325_v16 }
 0x102   : > { %590 = vrsqrt.f32 %v326_v17  ;;  %vm334_vm2 = vcmp.eq.f32.partialorder %v326_v17, inf  ;;  %v337_v27 = vand.u32 2147483648, %v326_v17  ;;  %vm336_vm3 = vcmp.eq.f32.partialorder %v326_v17, 0.0 }
 0x108   : > { %v591_v18 = vpop.eup %590 }
 0x109   : > { %v328_v20 = vmul.f32 %v591_v18, %v326_v17 }
 0x10b   : > { %v329_v22 = vmul.f32 %v591_v18, %v328_v20 }
 0x10d   : > { %v330_v23 = vmul.f32 0.5, %v329_v22 }
 0x10f   : > { %v331_v24 = vsub.f32 1.5, %v330_v23 }
 0x111   : > { %v332_v25 = vmul.f32 %v591_v18, %v331_v24 }
 0x113   : > { %v333_v26 = vmul.f32 %v332_v25, %v326_v17 }
 0x115   : > { %v335_v28 = vsel %vm334_vm2, %v326_v17, %v333_v26 }
 0x116   : > { %v338_v29 = vsel %vm336_vm3, %v337_v27, %v335_v28 }
 0x117   : > { %v339_v30 = vadd.f32 1e-06, %v338_v29 }
 0x119   : > { %592 = vrcp.f32 %v339_v30 }
 0x11f   : > { %v593_v32 = vpop.eup %592 }
 0x120   : > { %v341_v33 = vmul.f32 %v593_v32, %v321_v11 }
 0x122   : > { %v345_v35 = vmul.f32 %v584_v31, %v341_v33 }
 0x124   : > { %v349_v36 = vadd.f32 %v585_v34, %v345_v35 }
 0x126   : > { %v350_v37 = vpack.c.bf16 %v349_v36, %v349_v36 }
 0x128   : > { %533 = vmatmul.msk.bf16.vlgmr.msra.gmra.mxu0 %vm309_vm0, %v350_v37 }
 0x1a5   : > { %v383_v41 = vpop.f32.mrf.mxu0 }
 0x1a6   : > { %v384_v42 = vadd.f32 %v586_v40, %v383_v41 }
 0x1a8   : > { %v387_v43 = vmax.f32 %v384_v42, 0.0 }
 0x1aa   : > { %v388_v44 = vpack.c.bf16 %v387_v43, %v387_v43 }
 0x1ac   : > { %550 = vmatmul.msk.bf16.vlgmr.msra.gmra.mxu1 %vm425_vm4, %v388_v44 }
 0x1ad   : > { %v385_v45 = vpop.f32.mrf.mxu0 }
 0x229   : > { %v438_v47 = vpop.f32.mrf.mxu1 }
 0x22a   : > { %v439_v48 = vadd.f32 %v587_v46, %v438_v47 }
 0x22c   : > { %v442_v49 = vadd.f32 %v439_v48, %v685_v0 }
 0x22e   : > { %443 = vst.msk [vmem:[%s304_s13] sm:$0xff] %vm309_vm0, %v442_v49 }
 0x231   : > { %v440_v50 = vpop.f32.mrf.mxu1 }
 0x232 PF: > { %s17_s26 = sadd.s32 1, %s616_s26   ;;  %s746_s24 = smov %s612_s25 }
 0x233   : > { %p14_p5 = scmp.ge.s32.totalorder %s17_s26, 4   ;;  %s747_s25 = smov %s749_s27 }
 0x235   :  { %16 = sbr.rel (!%p14_p5) target bundleno = 2 (0x2), region = 78 }

// kernel: encoder_forward.8
= control target key start
LH: loop header
LB: loop body
LE: loop exit
PB: predicated region body
PF: predicated region fallthrough
CT: control target
= control target key end

     0   :  { %s1139_s21 = smov 0   ;;  %s1141_s22 = smov 0   ;;  %s1313_s0 = inlined_call_operand.vmem [shape: bf16[3,2,4,8,8], index: 0, kind: input, shape index: {}, may-alias: {0,1,2}]   ;;  %s1314_s1 = inlined_call_operand.vmem [shape: bf16[3,2,4,8,8], index: 1, kind: input, shape index: {}, may-alias: {0,1,2}]   ;;  %s1315_s2 = inlined_call_operand.vmem [shape: bf16[3,2,4,8,8], index: 2, kind: input, shape index: {}, may-alias: {0,1,2}]   ;;  %s1316_s3 = inlined_call_operand.vmem [shape: bf16[4,8,32], index: 3, kind: input, shape index: {}]   ;;  %s1317_s4 = inlined_call_operand.vmem [shape: f32[1,32], index: 4, kind: input, shape index: {}]   ;;  %s1318_s5 = inlined_call_operand.vmem [shape: f32[2,8,32], index: 5, kind: input, shape index: {}, may-alias: {5,6}]   ;;  %s1319_s6 = inlined_call_operand.vmem [shape: f32[2,8,32], index: 6, kind: output, shape index: {}, may-alias: {5,6}]  }
   0x1   :  { %s1143_s23 = smov 0  }
   0x2 LB: > { %s35_s24 = sadd.s32 1, %s1095_s22  ;;  %p985_p0 = scmp.ge.s32.totalorder %s1099_s23, 1  ;;  %s1099_s23 = sphi %s1143_s23, %s16_s23   ;;  %s1095_s22 = sphi %s1141_s22, %s1321_s22   ;;  %s1091_s21 = sphi %s1139_s21, %s1320_s21  }
   0x3   : > { %p37_p1 = scmp.ge.s32.totalorder %s35_s24, 2  ;;  %p284_p2 = scmp.lt.s32.totalorder %s1099_s23, 3 }
   0x5   : > { %s1323_s24 = smov (%p37_p1, %s35_s24), 0  ;;  %p285_p3 = pnand %p985_p0, %p284_p2 }
   0x6   : > { %p344_p4 = scmp.lt.s32.totalorder (!%p285_p3), %s1091_s21, 1 }
   0x7   : > { %288 = sbr.rel (%p285_p3) target bundleno = 783 (0x30f), region = 44 }
   0xc   : > { %s1325_s21 = smov (!%p344_p4, %s1091_s21), 1  ;;  %vm398_vm0 = vcmask 64512   ;;  %vm389_vm1 = vcmask 7168   ;;  %v1101_v12 = vmov -inf   ;;  %v1102_v25 = vmov 0  }
   0xd   : > { %s1160_s25 = sshll.u32 %s1325_s21, 4  ;;  %390 = vst.msk [vmem:[#allocation2] sm:$0xff] %vm389_vm1, %v1101_v12  ;;  %1050 = vset.pattern.permute.xlu0 %v1102_v25  ;;  %1049 = vset.pattern.permute.xlu2 %v1102_v25  ;;  %v1103_v26 = vmov 0.0   ;;  %vm620_vm2 = vcmask 1043456   ;;  %s992_s19 = sshll.u32 %s1325_s21, 3  ;;  %vm842_vm3 = vcmask 261120  }
   0xe   : > { %s913_s28 = scalar_lea.vmem %s1314_s1, %s1160_s25  ;;  %s351_s7 = scalar_lea.vmem %s1313_s0, %s1160_s25  ;;  %391 = vst.msk [vmem:[#allocation2 + $0x8] sm:$0xff] %vm389_vm1, %v1101_v12  ;;  %1051 = vset.pattern.permute.xlu1 %v1102_v25 }
   0xf   : > { %v994_v0 = vld [vmem:[%s913_s28 + $0x20] sm:$0xf]  ;;  %v996_v1 = vld [vmem:[%s913_s28 + $0x28] sm:$0xf]  ;;  %v995_v4 = vld [vmem:[%s913_s28 + $0x24] sm:$0xf]  ;;  %s918_s10 = scalar_lea.vmem %s1315_s2, %s1160_s25  ;;  %s376_s26 = scalar_lea.vmem %s1318_s5, %s992_s19 }
  0x10   : > { %v420_v2 = vsel %vm398_vm0, %v994_v0, 0  ;;  %v458_v3 = vsel %vm398_vm0, %v996_v1, 0  ;;  %v439_v5 = vsel %vm398_vm0, %v995_v4, 0  ;;  %v997_v6 = vld [vmem:[%s913_s28 + $0x2c] sm:$0xf]  ;;  %392 = vst.msk [vmem:[#allocation2 + $0x10] sm:$0xff] %vm389_vm1, %v1101_v12  ;;  %s383_s21 = scalar_lea.vmem %s1319_s6, %s992_s19 }
  0x11   : > { %429 = vmatpush.bf16.xpose.msra.mxu0 %v420_v2  ;;  %467 = vmatpush.bf16.xpose.msra.mxu2 %v458_v3  ;;  %v477_v7 = vsel %vm398_vm0, %v997_v6, 0  ;;  %v403_v8 = vld [vmem:[%s351_s7] sm:$0xf]  ;;  %v405_v9 = vld [vmem:[%s351_s7 + $0x8] sm:$0xf]  ;;  %393 = vst.msk [vmem:[#allocation2 + $0x18] sm:$0xff] %vm389_vm1, %v1101_v12 }
  0x12   : > { %448 = vmatpush.bf16.xpose.msra.mxu1 %v439_v5  ;;  %486 = vmatpush.bf16.xpose.msra.mxu3 %v477_v7  ;;  %v404_v10 = vld [vmem:[%s351_s7 + $0x4] sm:$0xf]  ;;  %v406_v11 = vld [vmem:[%s351_s7 + $0xc] sm:$0xf]  ;;  %396 = vst.msk [vmem:[#allocation3 + $0x10] sm:$0xff] %vm389_vm1, %v1103_v26 }
  0x13   : > { %394 = vst.msk [vmem:[#allocation3] sm:$0xff] %vm389_vm1, %v1103_v26  ;;  %v1000_v43 = vld [vmem:[%s918_s10 + $0x48] sm:$0xf]  ;;  %v1001_v45 = vld [vmem:[%s918_s10 + $0x4c] sm:$0xf] }
  0x14   : > { %395 = vst.msk [vmem:[#allocation3 + $0x8] sm:$0xff] %vm389_vm1, %v1103_v26  ;;  %v1206_v27 = vld [vmem:[#allocation2] sm:$0xff]  ;;  %v660_v44 = vsel %vm620_vm2, %v1000_v43, 0  ;;  %v679_v46 = vsel %vm620_vm2, %v1001_v45, 0 }
  0x15   : > { %397 = vst.msk [vmem:[#allocation3 + $0x18] sm:$0xff] %vm389_vm1, %v1103_v26  ;;  %v1218_v33 = vld [vmem:[#allocation2 + $0x8] sm:$0xff]  ;;  %v998_v47 = vld [vmem:[%s918_s10 + $0x40] sm:$0xf]  ;;  %v999_v50 = vld [vmem:[%s918_s10 + $0x44] sm:$0xf] }
  0x16   : > { %399 = vst.msk [vmem:[#allocation4] sm:$0xff] %vm398_vm0, %v1103_v26  ;;  %v622_v48 = vsel %vm620_vm2, %v998_v47, 0  ;;  %v641_v52 = vsel %vm620_vm2, %v999_v50, 0 }
  0x17   : > { %400 = vst.msk [vmem:[#allocation4 + $0x8] sm:$0xff] %vm398_vm0, %v1103_v26  ;;  %v1216_v31 = vld [vmem:[#allocation2 + $0x10] sm:$0xff] }
  0x18   : > { %1002 = vmatmul.msk.bf16.vlgmr.msra.gmra.mxu0 %vm398_vm0, %v403_v8  ;;  %1004 = vmatmul.msk.bf16.vlgmr.msra.gmra.mxu2 %vm398_vm0, %v405_v9  ;;  %401 = vst.msk [vmem:[#allocation4 + $0x10] sm:$0xff] %vm398_vm0, %v1103_v26  ;;  %v495_v39 = vld [vmem:[#allocation2 + $0x18] sm:$0xff] }
  0x19   : > { %1003 = vmatmul.msk.bf16.vlgmr.msra.gmra.mxu1 %vm398_vm0, %v404_v10  ;;  %1005 = vmatmul.msk.bf16.vlgmr.msra.gmra.mxu3 %vm398_vm0, %v406_v11  ;;  %402 = vst.msk [vmem:[#allocation4 + $0x18] sm:$0xff] %vm398_vm0, %v1103_v26 }
  0x1a   : > { %669 = vmatpush.bf16.msrb.mxu2 %v660_v44  ;;  %688 = vmatpush.bf16.msrb.mxu3 %v679_v46 }
  0x1b   : > { %631 = vmatpush.bf16.msrb.mxu0 %v622_v48  ;;  %650 = vmatpush.bf16.msrb.mxu1 %v641_v52 }
  0x1f   : > { %v587_v46 = vld [vmem:[#allocation4 + $0x10] sm:$0xff] }
  0x20   : > { %v588_v44 = vld [vmem:[#allocation4 + $0x18] sm:$0xff] }
  0x95   : > { %v1182_v13 = vpop.f32.mrf.mxu0 }
  0x96   : > { %v496_v14 = vsel %vm398_vm0, %v1182_v13, -inf  ;;  %v1186_v15 = vpop.f32.mrf.mxu1 }
  0x97   : > { %497 = vmax.xlane.f32.xlu1 %v496_v14  ;;  %v499_v18 = vsel %vm398_vm0, %v1186_v15, -inf }
  0x9b   : > { %v1188_v16 = vpop.f32.mrf.mxu2 }
  0x9c   : > { %v502_v17 = vsel %vm398_vm0, %v1188_v16, -inf  ;;  %v1194_v20 = vpop.f32.mrf.mxu3 }
  0x9d   : > { %503 = vmax.xlane.f32.xlu0 %v502_v17  ;;  %v433_v19 = vpop.f32.mrf.mxu0  ;;  %v505_v22 = vsel %vm398_vm0, %v1194_v20, -inf }
  0x9e   : > { %v452_v21 = vpop.f32.mrf.mxu1  ;;  %v558_v19 = vld [vmem:[#allocation3 + $0x10] sm:$0xff] }
  0x9f   : > { %500 = vmax.xlane.f32.xlu1 %v499_v18 }
  0xa3   : > { %v471_v23 = vpop.f32.mrf.mxu2 }
  0xa4   : > { %v490_v24 = vpop.f32.mrf.mxu3  ;;  %v559_v23 = vld [vmem:[#allocation3 + $0x18] sm:$0xff] }
  0xa5   : > { %506 = vmax.xlane.f32.xlu0 %v505_v22 }
 0x10a   : > { %v498_v28 = vpop.xlane.xlu1 %497 }
 0x10b   : > { %v1209_v29 = vmax.f32 %v1206_v27, %v498_v28  ;;  %v556_v28 = vld [vmem:[#allocation3] sm:$0xff] }
 0x10d   : > { %v512_v30 = vsub.f32 %v1206_v27, %v1209_v29  ;;  %702 = vst.msk [vmem:[#allocation2] sm:$0xff] %vm389_vm1, %v1209_v29  ;;  %526 = vperm.xlu0 %1050, %v1209_v29  }
 0x10f   : > { %v516_v14 = vmul.f32 1.442695, %v512_v30 }
 0x110   : > { %v504_v32 = vpop.xlane.xlu0 %503 }
 0x111   : > { %v1221_v34 = vmax.f32 %v1216_v31, %v504_v32 }
 0x112   : > { %v501_v35 = vpop.xlane.xlu1 %500 }
 0x113   : > { %v514_v36 = vsub.f32 %v1216_v31, %v1221_v34  ;;  %704 = vst.msk [vmem:[#allocation2 + $0x10] sm:$0xff] %vm389_vm1, %v1221_v34  ;;  %v1228_v37 = vmax.f32 %v1218_v33, %v501_v35  ;;  %536 = vperm.xlu2 %1049, %v1221_v34   ;;  %v557_v35 = vld [vmem:[#allocation3 + $0x8] sm:$0xff] }
 0x115   : > { %v513_v38 = vsub.f32 %v1218_v33, %v1228_v37  ;;  %703 = vst.msk [vmem:[#allocation2 + $0x8] sm:$0xff] %vm389_vm1, %v1228_v37  ;;  %531 = vperm.xlu1 %1051, %v1228_v37  }
 0x118   : > { %v507_v40 = vpop.xlane.xlu0 %506 }
 0x119   : > { %v511_v41 = vmax.f32 %v495_v39, %v507_v40 }
 0x11b   : > { %v515_v42 = vsub.f32 %v495_v39, %v511_v41  ;;  %705 = vst.msk [vmem:[#allocation2 + $0x18] sm:$0xff] %vm389_vm1, %v511_v41  ;;  %541 = vperm.xlu2 %1049, %v511_v41  }
 0x11d   : > { %v522_v8 = vmul.f32 1.442695, %v515_v42 }
 0x16d   : > { %v537_v49 = vpop.permute.xlu2 %536 }
 0x16e   : > { %v546_v51 = vsub.f32 %v1188_v16, %v537_v49  ;;  %v518_v16 = vmul.f32 1.442695, %v513_v38 }
 0x170   : > { %v552_v53 = vmul.f32 1.442695, %v546_v51 }
 0x172   : > { %1053 = vpow2.f32 %v552_v53 }
 0x175   : > { %v542_v54 = vpop.permute.xlu2 %541 }
 0x176   : > { %v547_v55 = vsub.f32 %v1194_v20, %v542_v54 }
 0x178   : > { %v1054_v56 = vpop.eup %1053  ;;  %v554_v57 = vmul.f32 1.442695, %v547_v55 }
 0x179   : > { %v570_v58 = vsel %vm398_vm0, %v1054_v56, 0.0  ;;  %v615_v59 = vpack.c.bf16 %v1054_v56, %v1054_v56 }
 0x17a   : > { %1055 = vpow2.f32 %v554_v57  ;;  %571 = vadd.xlane.f32.xlu2 %v570_v58  ;;  %v585_v57 = vld [vmem:[#allocation4] sm:$0xff] }
 0x17b   : > { %1008 = vmatmul.msk.bf16.vlgmr.msrb.gmra.mxu2 %vm398_vm0, %v615_v59 }
 0x17f   : > { %v527_v60 = vpop.permute.xlu0 %526 }
 0x180   : > { %v1056_v61 = vpop.eup %1055  ;;  %v544_v62 = vsub.f32 %v1182_v13, %v527_v60  ;;  %v520_v13 = vmul.f32 1.442695, %v514_v36 }
 0x181   : > { %v573_v63 = vsel %vm398_vm0, %v1056_v61, 0.0  ;;  %v616_v0 = vpack.c.bf16 %v1056_v61, %v1056_v61 }
 0x182   : > { %v548_v1 = vmul.f32 1.442695, %v544_v62  ;;  %574 = vadd.xlane.f32.xlu1 %v573_v63  ;;  %v586_v63 = vld [vmem:[#allocation4 + $0x8] sm:$0xff] }
 0x183   : > { %1009 = vmatmul.msk.bf16.vlgmr.msrb.gmra.mxu3 %vm398_vm0, %v616_v0 }
 0x184   : > { %1057 = vpow2.f32 %v548_v1 }
 0x187   : > { %v532_v2 = vpop.permute.xlu1 %531 }
 0x188   : > { %v545_v3 = vsub.f32 %v1186_v15, %v532_v2 }
 0x18a   : > { %v1058_v4 = vpop.eup %1057  ;;  %v550_v5 = vmul.f32 1.442695, %v545_v3  ;;  %v1015_v3 = vld [vmem:[%s1316_s3 + $0xc] sm:$0xf] }
 0x18b   : > { %v564_v6 = vsel %vm398_vm0, %v1058_v4, 0.0  ;;  %v613_v7 = vpack.c.bf16 %v1058_v4, %v1058_v4  ;;  %v826_v4 = vsel %vm620_vm2, %v1015_v3, 0 }
 0x18c   : > { %1059 = vpow2.f32 %v550_v5  ;;  %565 = vadd.xlane.f32.xlu0 %v564_v6  ;;  %835 = vmatpush.bf16.msra.mxu3 %v826_v4  ;;  %v1013_v5 = vld [vmem:[%s1316_s3 + $0x8] sm:$0xf] }
 0x18d   : > { %1006 = vmatmul.msk.bf16.vlgmr.msrb.gmra.mxu0 %vm398_vm0, %v613_v7  ;;  %1061 = vpow2.f32 %v522_v8  ;;  %v803_v6 = vsel %vm620_vm2, %v1013_v5, 0  ;;  %v1011_v7 = vld [vmem:[%s1316_s3 + $0x4] sm:$0xf] }
 0x18e   : > { %1063 = vpow2.f32 %v520_v13  ;;  %812 = vmatpush.bf16.msra.mxu2 %v803_v6  ;;  %v780_v8 = vsel %vm620_vm2, %v1011_v7, 0 }
 0x18f   : > { %1065 = vpow2.f32 %v516_v14  ;;  %789 = vmatpush.bf16.msra.mxu1 %v780_v8 }
 0x190   : > { %1067 = vpow2.f32 %v518_v16 }
 0x192   : > { %v1060_v9 = vpop.eup %1059 }
 0x193   : > { %v567_v10 = vsel %vm398_vm0, %v1060_v9, 0.0  ;;  %v614_v11 = vpack.c.bf16 %v1060_v9, %v1060_v9  ;;  %v1062_v12 = vpop.eup %1061  ;;  %v752_v9 = vld [vmem:[%s1316_s3] sm:$0xf] }
 0x194   : > { %568 = vadd.xlane.f32.xlu2 %v567_v10  ;;  %v1064_v15 = vpop.eup %1063  ;;  %v563_v24 = vmul.f32 %v1062_v12, %v559_v23  ;;  %v757_v10 = vsel %vm620_vm2, %v752_v9, 0 }
 0x195   : > { %1007 = vmatmul.msk.bf16.vlgmr.msrb.gmra.mxu1 %vm398_vm0, %v614_v11  ;;  %v1066_v17 = vpop.eup %1065  ;;  %v562_v20 = vmul.f32 %v1064_v15, %v558_v19  ;;  %766 = vmatpush.bf16.msra.mxu0 %v757_v10 }
 0x196   : > { %v1068_v18 = vpop.eup %1067  ;;  %v560_v31 = vmul.f32 %v1066_v17, %v556_v28 }
 0x197   : > { %v561_v39 = vmul.f32 %v1068_v18, %v557_v35 }
 0x19b   : > { %606 = vperm.xlu1 %1051, %v1062_v12  }
 0x1ac   : > { %601 = vperm.xlu2 %1049, %v1064_v15  }
 0x1b4   : > { %591 = vperm.xlu2 %1049, %v1066_v17  }
 0x1bc   : > { %596 = vperm.xlu2 %1049, %v1068_v18  }
 0x1ed   : > { %v572_v21 = vpop.xlane.xlu2 %571 }
 0x1ee   : > { %v578_v22 = vadd.f32 %v572_v21, %v562_v20 }
 0x1f0   : > { %583 = vst.msk [vmem:[#allocation3 + $0x10] sm:$0xff] %vm389_vm1, %v578_v22 }
 0x1f5   : > { %v575_v25 = vpop.xlane.xlu1 %574 }
 0x1f6   : > { %v579_v26 = vadd.f32 %v575_v25, %v563_v24 }
 0x1f7   : > { %v715_v27 = vld [vmem:[#allocation3 + $0x10] sm:$0xff] }
 0x1f8   : > { %584 = vst.msk [vmem:[#allocation3 + $0x18] sm:$0xff] %vm389_vm1, %v579_v26  ;;  %1069 = vrcp.f32 %v715_v27 }
 0x1fe   : > { %v1070_v29 = vpop.eup %1069  ;;  %v671_v30 = vpop.f32.mrf.mxu2 }
 0x1ff   : > { %733 = vperm.xlu0 %1050, %v1070_v29   ;;  %v566_v32 = vpop.xlane.xlu0 %565  ;;  %v716_v33 = vld [vmem:[#allocation3 + $0x18] sm:$0xff] }
 0x200   : > { %v576_v34 = vadd.f32 %v566_v32, %v560_v31  ;;  %1071 = vrcp.f32 %v716_v33  ;;  %v1052_v32 = vld [vmem:[%s1317_s4] ss:$0 sm:$0xff] }
 0x201   : > { %v745_v33 = vld [vmem:[%s376_s26] sm:$0xff] }
 0x202   : > { %581 = vst.msk [vmem:[#allocation3] sm:$0xff] %vm389_vm1, %v576_v34  ;;  %v750_v35 = vadd.f32 %v1052_v32, %v745_v33 }
 0x206   : > { %v1072_v36 = vpop.eup %1071  ;;  %v673_v37 = vpop.f32.mrf.mxu2 }
 0x207   : > { %v690_v38 = vpop.f32.mrf.mxu3  ;;  %v569_v40 = vpop.xlane.xlu2 %568  ;;  %738 = vperm.xlu2 %1049, %v1072_v36  }
 0x208   : > { %v577_v41 = vadd.f32 %v569_v40, %v561_v39 }
 0x209   : > { %v713_v42 = vld [vmem:[#allocation3] sm:$0xff] }
 0x20a   : > { %582 = vst.msk [vmem:[#allocation3 + $0x8] sm:$0xff] %vm389_vm1, %v577_v41  ;;  %v633_v43 = vpop.f32.mrf.mxu0  ;;  %1073 = vrcp.f32 %v713_v42 }
 0x20d   : > { %v607_v45 = vpop.permute.xlu1 %606 }
 0x20e   : > { %v612_v47 = vmul.f32 %v607_v45, %v588_v44 }
 0x20f   : > { %v692_v48 = vpop.f32.mrf.mxu3  ;;  %v602_v49 = vpop.permute.xlu2 %601 }
 0x210   : > { %v1074_v50 = vpop.eup %1073  ;;  %v697_v51 = vadd.f32 %v690_v38, %v612_v47  ;;  %v611_v52 = vmul.f32 %v602_v49, %v587_v46 }
 0x211   : > { %723 = vperm.xlu1 %1051, %v1074_v50   ;;  %v714_v53 = vld [vmem:[#allocation3 + $0x8] sm:$0xff] }
 0x212   : > { %701 = vst.msk [vmem:[#allocation4 + $0x18] sm:$0xff] %vm398_vm0, %v697_v51  ;;  %v696_v54 = vadd.f32 %v671_v30, %v611_v52  ;;  %v635_v55 = vpop.f32.mrf.mxu0  ;;  %v652_v56 = vpop.f32.mrf.mxu1  ;;  %1075 = vrcp.f32 %v714_v53 }
 0x214   : > { %700 = vst.msk [vmem:[#allocation4 + $0x10] sm:$0xff] %vm398_vm0, %v696_v54 }
 0x217   : > { %v592_v58 = vpop.permute.xlu2 %591 }
 0x218   : > { %v1076_v59 = vpop.eup %1075  ;;  %v609_v60 = vmul.f32 %v592_v58, %v585_v57 }
 0x219   : > { %728 = vperm.xlu2 %1049, %v1076_v59   ;;  %v712_v11 = vld [vmem:[#allocation4 + $0x18] sm:$0xff] }
 0x21a   : > { %v694_v61 = vadd.f32 %v633_v43, %v609_v60  ;;  %v654_v62 = vpop.f32.mrf.mxu1 }
 0x21b   : > { %v711_v16 = vld [vmem:[#allocation4 + $0x10] sm:$0xff] }
 0x21c   : > { %698 = vst.msk [vmem:[#allocation4] sm:$0xff] %vm398_vm0, %v694_v61 }
 0x21f   : > { %v597_v0 = vpop.permute.xlu2 %596 }
 0x220   : > { %v610_v1 = vmul.f32 %v597_v0, %v586_v63 }
 0x222   : > { %v695_v2 = vadd.f32 %v652_v56, %v610_v1 }
 0x223   : > { %v709_v24 = vld [vmem:[#allocation4] sm:$0xff] }
 0x224   : > { %699 = vst.msk [vmem:[#allocation4 + $0x8] sm:$0xff] %vm398_vm0, %v695_v2 }
 0x22b   : > { %v710_v18 = vld [vmem:[#allocation4 + $0x8] sm:$0xff] }
 0x261   : > { %v739_v12 = vpop.permute.xlu2 %738 }
 0x262   : > { %v744_v13 = vmul.f32 %v739_v12, %v712_v11 }
 0x264   : > { %v819_v14 = vpack.c.bf16 %v744_v13, %v744_v13 }
 0x266   : > { %1016 = vmatmul.msk.bf16.vlgmr.msra.gmra.mxu3 %vm398_vm0, %v819_v14 }
 0x271   : > { %v734_v15 = vpop.permute.xlu0 %733 }
 0x272   : > { %v743_v17 = vmul.f32 %v734_v15, %v711_v16 }
 0x273   : > { %v729_v19 = vpop.permute.xlu2 %728 }
 0x274   : > { %v796_v20 = vpack.c.bf16 %v743_v17, %v743_v17  ;;  %v742_v21 = vmul.f32 %v729_v19, %v710_v18 }
 0x276   : > { %v773_v22 = vpack.c.bf16 %v742_v21, %v742_v21  ;;  %1014 = vmatmul.msk.bf16.vlgmr.msra.gmra.mxu2 %vm398_vm0, %v796_v20 }
 0x278   : > { %1012 = vmatmul.msk.bf16.vlgmr.msra.gmra.mxu1 %vm398_vm0, %v773_v22 }
 0x283   : > { %v724_v23 = vpop.permute.xlu1 %723 }
 0x284   : > { %v741_v25 = vmul.f32 %v724_v23, %v709_v24 }
 0x286   : > { %v751_v26 = vpack.c.bf16 %v741_v25, %v741_v25 }
 0x288   : > { %1010 = vmatmul.msk.bf16.vlgmr.msra.gmra.mxu0 %vm398_vm0, %v751_v26 }
 0x2e9   : > { %v837_v27 = vpop.f32.mrf.mxu3 }
 0x2f1   : > { %v839_v28 = vpop.f32.mrf.mxu3 }
 0x2f5   : > { %v791_v29 = vpop.f32.mrf.mxu1 }
 0x2f9   : > { %v814_v30 = vpop.f32.mrf.mxu2 }
 0x2fd   : > { %v793_v31 = vpop.f32.mrf.mxu1 }
 0x301   : > { %v816_v34 = vpop.f32.mrf.mxu2 }
 0x305   : > { %v768_v36 = vpop.f32.mrf.mxu0 }
 0x306   : > { %v772_v37 = vadd.f32 %v768_v36, %v750_v35 }
 0x308   : > { %v795_v38 = vadd.f32 %v791_v29, %v772_v37 }
 0x30a   : > { %v818_v39 = vadd.f32 %v814_v30, %v795_v38 }
 0x30c   : > { %v841_v40 = vadd.f32 %v837_v27, %v818_v39 }
 0x30d   : > { %v770_v41 = vpop.f32.mrf.mxu0 }
 0x30e   : > { %843 = vst.msk [vmem:[%s383_s21] sm:$0xff] %vm842_vm3, %v841_v40 }
 0x30f PF: > { %s16_s23 = sadd.s32 1, %s1099_s23   ;;  %s1320_s21 = smov %s1095_s22 }
 0x310   : > { %p13_p5 = scmp.ge.s32.totalorder %s16_s23, 4   ;;  %s1321_s22 = smov %s1323_s24 }
 0x312   :  { %15 = sbr.rel (!%p13_p5) target bundleno = 2 (0x2), region = 94 }

// kernel: encoder_forward.13
= control target key start
LH: loop header
LB: loop body
LE: loop exit
PB: predicated region body
PF: predicated region fallthrough
CT: control target
= control target key end

     0   :  { %8 = vsyncpa [#allocation3], 0  ;;  %s619_s0 = inlined_call_operand.vmem [shape: f32[2,8,32], index: 0, kind: input, shape index: {}]   ;;  %s620_s1 = inlined_call_operand.vmem [shape: f32[1,32], index: 1, kind: input, shape index: {}]   ;;  %s621_s2 = inlined_call_operand.vmem [shape: f32[1,32], index: 2, kind: input, shape index: {}]   ;;  %s622_s3 = inlined_call_operand.hbm [shape: f32[2,8,32], index: 3, kind: output, shape index: {}]  }
   0x1   :  { %10 = vsyncpa [#allocation3 + $0x1], 0  ;;  %s513_s12 = smov 0   ;;  %s515_s13 = smov 0  }
   0x2   :  { %s517_s14 = smov 0   ;;  %s519_s15 = smov 0  }
   0x3   :  { %s521_s16 = smov 0   ;;  %s523_s17 = smov 0  }
   0x4 LB: > { %s337_s18 = sadd.s32 4294967295, %s490_s17   ;;  %s338_s19 = sadd.s32 4294967294, %s490_s17   ;;  %s490_s17 = sphi %s523_s17, %s16_s17   ;;  %s486_s16 = sphi %s521_s16, %s629_s16   ;;  %s482_s15 = sphi %s519_s15, %s628_s15   ;;  %s478_s14 = sphi %s517_s14, %s627_s14   ;;  %s474_s13 = sphi %s515_s13, %s626_s13   ;;  %s470_s12 = sphi %s513_s12, %s625_s12  }
   0x5   : > { %s28_s20 = sadd.s32 1, %s486_s16  ;;  %s107_s21 = sadd.s32 1, %s478_s14 }
   0x6   : > { %p30_p0 = scmp.ge.s32.totalorder %s28_s20, 2  ;;  %p117_p1 = scmp.ne.s32.totalorder %s478_s14, %s474_s13 }
   0x7   : > { %p118_p2 = scmp.eq.s32.totalorder %s337_s18, 1  ;;  %p123_p3 = scmp.ne.s32.totalorder %s474_s13, %s470_s12 }
   0x8   : > { %s631_s20 = smov (%p30_p0, %s28_s20), 0  ;;  %p124_p5 = scmp.eq.s32.totalorder %s338_s19, 1 }
   0x9   : > { %p553_p4 = por %p118_p2, %p117_p1  ;;  %s102_s23 = ssub.s32 %s486_s16, %s631_s20 }
   0xa   : > { %p341_p6 = scmp.ge.s32.totalorder %s490_s17, 1  ;;  %p105_p7 = scmp.eq.s32.totalorder %s102_s23, 0 }
   0xb   : > { %p560_p8 = por %p124_p5, %p123_p3  ;;  %p158_p9 = scmp.lt.s32.totalorder %s490_s17, 3 }
   0xc   : > { %s566_s25 = scalar_select %p105_p7, %s478_s14, %s107_s21  }
   0xd   : > { %p159_p10 = pnand %p341_p6, %p158_p9 }
   0xe   : > { %p184_p11 = scmp.lt.s32.totalorder (!%p159_p10), %s482_s15, 1  ;;  %s181_s4 = sand.u32 (!%p159_p10), 1, %s474_s13  }
   0xf   : > { %162 = sbr.rel (%p159_p10) target bundleno = 316 (0x13c), region = 32  ;;  %s342_s5 = sshll.u32 (!%p159_p10), %s181_s4, 3 }
  0x10   : > { %s345_s6 = sshll.u32 (!%p159_p10), %s482_s15, 3 }
  0x11   : > { %s261_s11 = scalar_lea.hbm (!%p159_p10), %s622_s3, %s345_s6 }
  0x12   : > { %s265_s23 = sshll.u32 (!%p159_p10), %s261_s11, 4  ;;  %s266_s23 = int_to_ptr.hbm [resolvable:$true] %s265_s23 }
  0x14   : > { %s185_s26 = scalar_select %p184_p11, %s482_s15, 1  ;;  %vm194_vm0 = vcmask 261120   ;;  %v492_v2 = vmov 32.0   ;;  %v404_v36 = vld [vmem:[%s620_s1] ss:$0 sm:$0xff] }
  0x15   : > { %406 = vrcp.f32 %v492_v2  ;;  %v405_v39 = vld [vmem:[%s621_s2] ss:$0 sm:$0xff]  ;;  %s183_s15 = scalar_lea.vmem [#allocation2], %s342_s5  ;;  %s432_s5 = scalar_lea.hbm %s622_s3, 16 }
  0x16   : > { %s343_s27 = sshll.u32 %s185_s26, 3  ;;  %s263_s21 = sshll.u32 %s183_s15, 4  ;;  %s264_s21 = int_to_ptr.vmem [resolvable:$true] %s263_s21 }
  0x17   : > { %s190_s30 = scalar_lea.vmem %s619_s0, %s343_s27  ;;  %s250_s26 = scalar_lea.sflag [#allocation3], %s181_s4 }
  0x18   : > { %v191_v0 = vld [vmem:[%s190_s30] sm:$0xff]  ;;  %s426_s27 = sshra.s32 %s266_s23, 4  ;;  %s427_s27 = int_to_ptr.hbm [resolvable:$true] %s426_s27 }
  0x19   : > { %v195_v1 = vsel %vm194_vm0, %v191_v0, 0.0  ;;  %s428_s28 = scalar_lea.hbm %s427_s27, 8  ;;  %p433_p1 = scmp.lt.s32.totalorder %s427_s27, %s622_s3 }
  0x1a   : > { %196 = vadd.xlane.f32.xlu0 %v195_v1  ;;  %p429_p12 = scmp.ne.s32.totalorder %s427_s27, %s428_s28  ;;  %p434_p2 = scmp.lt.s32.totalorder %s432_s5, %s428_s28 }
  0x1b   : > { %v407_v3 = vpop.eup %406 }
  0x1c   : > { %v199_v4 = vmul.f32 32.0, %v407_v3  ;;  %vm203_vm1 = vweird.f32 %v407_v3  ;;  %p430_p13 = pnand %p429_p12, %p553_p4  ;;  %p435_p3 = por %p434_p2, %p433_p1 }
  0x1e   : > { %v200_v5 = vsub.f32 1.0, %v199_v4  ;;  %p431_p0 = pneg %p430_p13 }
  0x20   : > { %v201_v6 = vmul.f32 %v407_v3, %v200_v5  ;;  %p436_p5 = pnand %p435_p3, %p431_p0 }
  0x22   : > { %v202_v7 = vadd.f32 %v407_v3, %v201_v6 }
  0x24   : > { %v204_v8 = vsel %vm203_vm1, %v407_v3, %v202_v7 }
  0x8d   : > { %v197_v9 = vpop.xlane.xlu0 %196 }
  0x8e   : > { %v205_v10 = vmul.f32 %v204_v8, %v197_v9 }
  0x90   : > { %v206_v11 = vsub.f32 %v191_v0, %v205_v10 }
  0x92   : > { %v207_v12 = vmul.f32 %v206_v11, %v206_v11 }
  0x94   : > { %v208_v13 = vsel %vm194_vm0, %v207_v12, 0.0 }
  0x95   : > { %209 = vadd.xlane.f32.xlu0 %v208_v13 }
 0x108   : > { %v210_v14 = vpop.xlane.xlu0 %209 }
 0x109   : > { %v211_v15 = vmul.f32 0.032258064, %v210_v14 }
 0x10b   : > { %408 = vrsqrt.f32 %v211_v15  ;;  %vm219_vm2 = vcmp.eq.f32.partialorder %v211_v15, inf  ;;  %v222_v23 = vand.u32 2147483648, %v211_v15  ;;  %vm221_vm3 = vcmp.eq.f32.partialorder %v211_v15, 0.0 }
 0x111   : > { %v409_v16 = vpop.eup %408 }
 0x112   : > { %v213_v17 = vmul.f32 %v409_v16, %v211_v15 }
 0x114   : > { %v214_v18 = vmul.f32 %v409_v16, %v213_v17 }
 0x116   : > { %v215_v19 = vmul.f32 0.5, %v214_v18 }
 0x118   : > { %v216_v20 = vsub.f32 1.5, %v215_v19 }
 0x11a   : > { %v217_v21 = vmul.f32 %v409_v16, %v216_v20 }
 0x11c   : > { %v218_v22 = vmul.f32 %v217_v21, %v211_v15 }
 0x11e   : > { %v220_v24 = vsel %vm219_vm2, %v211_v15, %v218_v22 }
 0x11f   : > { %v223_v25 = vsel %vm221_vm3, %v222_v23, %v220_v24 }
 0x120   : > { %v224_v26 = vadd.f32 1e-06, %v223_v25 }
 0x122   : > { %410 = vrcp.f32 %v224_v26  ;;  %v236_v30 = vand.u32 2147483648, %v224_v26  ;;  %v234_v32 = vand.u32 2147483647, %v224_v26  ;;  %vm230_vm5 = vweird.f32 %v224_v26 }
 0x124   : > { %v237_v34 = vor.u32 1.1754944e-38, %v236_v30  ;;  %vm235_vm7 = vcmp.eq.f32.partialorder %v234_v32, 8.507059e+37 }
 0x128   : > { %v411_v27 = vpop.eup %410 }
 0x129   : > { %v226_v28 = vmul.f32 %v411_v27, %v224_v26  ;;  %vm231_vm4 = vweird.f32 %v411_v27 }
 0x12a   : > { %vm232_vm6 = vmor %vm230_vm5, %vm231_vm4 }
 0x12b   : > { %v227_v29 = vsub.f32 1.0, %v226_v28 }
 0x12d   : > { %v228_v31 = vmul.f32 %v411_v27, %v227_v29 }
 0x12f   : > { %v229_v33 = vadd.f32 %v411_v27, %v228_v31 }
 0x131   : > { %v233_v35 = vsel %vm232_vm6, %v411_v27, %v229_v33 }
 0x132   : > { %v238_v37 = vsel %vm235_vm7, %v237_v34, %v233_v35 }
 0x133   : > { %v239_v38 = vmul.f32 %v238_v37, %v206_v11 }
 0x135   : > { %v243_v40 = vmul.f32 %v404_v36, %v239_v38 }
 0x137   : > { %v247_v41 = vadd.f32 %v405_v39, %v243_v40 }
 0x139   : > { %248 = vst.msk [vmem:[%s183_s15] sm:$0xff] %vm194_vm0, %v247_v41 }
 0x13a   : > { %439 = shalt.err (!%p436_p5)
}
 0x13b   : > { %348 = dma.vmem_to_hbm [thread:$0]  (%p553_p4), %s264_s21, 128, %s266_s23, %s250_s26  }
 0x13c PF: > { %p354_p6 = scmp.ge.s32.totalorder %s490_s17, 2  ;;  %s277_s4 = sand.u32 1, %s470_s12  }
 0x13d   : > { %s278_s8 = scalar_lea.sflag [#allocation3], %s277_s4 }
 0x13e   : > { %p351_p7 = pnand %p354_p6, %p560_p8 }
 0x140   : > { %p352_p9 = pneg %p351_p7 }
 0x142   : > { %465 = dma.done.wait (%p352_p9), %s278_s8, 128  }
 0x143   : > { %467 = vsyncadd (%p352_p9), %s278_s8, 4294967168  ;;  %s16_s17 = sadd.s32 1, %s490_s17   ;;  %s625_s12 = smov %s474_s13 }
 0x144   : > { %p13_p10 = scmp.ge.s32.totalorder %s16_s17, 4   ;;  %s626_s13 = smov %s478_s14 }
 0x145   : > { %s627_s14 = smov %s566_s25  ;;  %s628_s15 = smov %s486_s16 }
 0x146   : > { %s629_s16 = smov %s631_s20  ;;  %15 = sbr.rel (!%p13_p10) target bundleno = 4 (0x4), region = 67 }
 0x14b   :  { %284 = vsyncpa [#allocation3], 1 }
 0x14c   :  { %286 = vsyncpa [#allocation3 + $0x1], 1 }

// kernel: encoder_forward.7
= control target key start
LH: loop header
LB: loop body
LE: loop exit
PB: predicated region body
PF: predicated region fallthrough
CT: control target
= control target key end

     0   :  { %s1246_s18 = smov 0   ;;  %s1248_s19 = smov 0   ;;  %s1476_s0 = inlined_call_operand.vmem [shape: f32[2,8,32], index: 0, kind: input, shape index: {}]   ;;  %s1477_s1 = inlined_call_operand.vmem [shape: f32[1,32], index: 1, kind: input, shape index: {}]   ;;  %s1478_s2 = inlined_call_operand.vmem [shape: f32[1,32], index: 2, kind: input, shape index: {}]   ;;  %s1479_s3 = inlined_call_operand.vmem [shape: bf16[3,4,32,8], index: 3, kind: input, shape index: {}]   ;;  %s1480_s4 = inlined_call_operand.vmem [shape: f32[3,4,1,8], index: 4, kind: input, shape index: {}]   ;;  %s1481_s5 = inlined_call_operand.vmem [shape: bf16[3,2,4,8,8], index: 5, kind: output, shape index: {}]  }
   0x1   :  { %s1250_s20 = smov 0   ;;  %s1252_s21 = smov 0  }
   0x2   :  { %s1254_s22 = smov 0  }
   0x3 LB: > { %s904_s23 = sadd.s32 4294967295, %s1213_s22   ;;  %s27_s24 = sadd.s32 1, %s1209_s21  ;;  %s1213_s22 = sphi %s1254_s22, %s15_s22   ;;  %s1209_s21 = sphi %s1252_s21, %s1486_s21   ;;  %s1205_s20 = sphi %s1250_s20, %s1485_s20   ;;  %s1201_s19 = sphi %s1248_s19, %s1484_s19   ;;  %s1197_s18 = sphi %s1246_s18, %s1483_s18  }
   0x4   : > { %p29_p0 = scmp.ge.s32.totalorder %s27_s24, 2  ;;  %s148_s25 = sadd.s32 1, %s1201_s19 }
   0x5   : > { %p158_p1 = scmp.ne.s32.totalorder %s1201_s19, %s1197_s18  ;;  %p159_p2 = scmp.eq.s32.totalorder %s904_s23, 1 }
   0x6   : > { %s1488_s24 = smov (%p29_p0, %s27_s24), 0  ;;  %p908_p4 = scmp.ge.s32.totalorder %s1213_s22, 1 }
   0x7   : > { %p1278_p3 = por %p159_p2, %p158_p1  ;;  %s143_s27 = ssub.s32 %s1209_s21, %s1488_s24 }
   0x8   : > { %p205_p5 = scmp.lt.s32.totalorder %s1213_s22, 3  ;;  %p146_p6 = scmp.eq.s32.totalorder %s143_s27, 0 }
   0xa   : > { %p206_p7 = pnand %p908_p4, %p205_p5 }
   0xb   : > { %s1287_s28 = scalar_select %p146_p6, %s1201_s19, %s148_s25  }
   0xc   : > { %209 = sbr.rel (%p206_p7) target bundleno = 481 (0x1e1), region = 40  ;;  %p234_p8 = scmp.lt.s32.totalorder (!%p206_p7), %s1205_s20, 1 }
   0xd   : > { %s231_s10 = sand.u32 (!%p206_p7), 1, %s1197_s18  }
   0xe   : > { %s1113_s15 = smul.u32 (!%p206_p7), 48, %s231_s10 }
  0x10   : > { %s1399_s25 = scalar_lea.vmem (!%p206_p7), [#allocation2], %s1113_s15 }
  0x11   : > { %s235_s29 = scalar_select %p234_p8, %s1205_s20, 1  ;;  %vm245_vm0 = vcmask 261120   ;;  %v1215_v2 = vmov 32.0   ;;  %v1089_v15 = vld [vmem:[%s1479_s3 + $0x8] sm:$0xff]  ;;  %v1091_v16 = vld [vmem:[%s1479_s3 + $0x18] sm:$0xff]  ;;  %v1088_v20 = vld [vmem:[%s1479_s3] sm:$0xff] }
  0x12   : > { %1169 = vrcp.f32 %v1215_v2  ;;  %v1093_v17 = vld [vmem:[%s1479_s3 + $0x28] sm:$0xff]  ;;  %v1095_v19 = vld [vmem:[%s1479_s3 + $0x38] sm:$0xff]  ;;  %316 = vmatpush.bf16.msra.mxu0 %v1089_v15  ;;  %354 = vmatpush.bf16.msra.mxu1 %v1091_v16  ;;  %v1090_v21 = vld [vmem:[%s1479_s3 + $0x10] sm:$0xff]  ;;  %vm324_vm4 = vcmask 60416   ;;  %s1112_s23 = sshll.u32 (%p1278_p3), %s1205_s20, 4 }
  0x13   : > { %s909_s30 = sshll.u32 %s235_s29, 3  ;;  %392 = vmatpush.bf16.msra.mxu2 %v1093_v17  ;;  %430 = vmatpush.bf16.msra.mxu3 %v1095_v19  ;;  %v1092_v22 = vld [vmem:[%s1479_s3 + $0x20] sm:$0xff]  ;;  %v1094_v23 = vld [vmem:[%s1479_s3 + $0x30] sm:$0xff]  ;;  %v1101_v26 = vld [vmem:[%s1479_s3 + $0x68] sm:$0xff] }
  0x14   : > { %s240_s8 = scalar_lea.vmem %s1476_s0, %s909_s30  ;;  %v1103_v27 = vld [vmem:[%s1479_s3 + $0x78] sm:$0xff]  ;;  %v1097_v28 = vld [vmem:[%s1479_s3 + $0x48] sm:$0xff]  ;;  %v1100_v31 = vld [vmem:[%s1479_s3 + $0x60] sm:$0xff]  ;;  %s754_s30 = scalar_lea.vmem (%p1278_p3), %s1481_s5, %s1112_s23 }
  0x15   : > { %v242_v0 = vld [vmem:[%s240_s8] sm:$0xff]  ;;  %v1099_v29 = vld [vmem:[%s1479_s3 + $0x58] sm:$0xff]  ;;  %v1102_v32 = vld [vmem:[%s1479_s3 + $0x70] sm:$0xff] }
  0x16   : > { %v246_v1 = vsel %vm245_vm0, %v242_v0, 0.0  ;;  %317 = vmatpush.bf16.msra.mxu0 %v1088_v20  ;;  %355 = vmatpush.bf16.msra.mxu1 %v1090_v21  ;;  %v1096_v33 = vld [vmem:[%s1479_s3 + $0x40] sm:$0xff]  ;;  %v1098_v34 = vld [vmem:[%s1479_s3 + $0x50] sm:$0xff]  ;;  %v1109_v50 = vld [vmem:[%s1479_s3 + $0xa8] sm:$0xff] }
  0x17   : > { %247 = vadd.xlane.f32.xlu0 %v246_v1  ;;  %393 = vmatpush.bf16.msra.mxu2 %v1092_v22  ;;  %v1155_v43 = vld [vmem:[%s1477_s1] ss:$0 sm:$0xff]  ;;  %v1111_v51 = vld [vmem:[%s1479_s3 + $0xb8] sm:$0xff]  ;;  %v1105_v52 = vld [vmem:[%s1479_s3 + $0x88] sm:$0xff] }
  0x18   : > { %v1170_v3 = vpop.eup %1169  ;;  %431 = vmatpush.bf16.msra.mxu3 %v1094_v23  ;;  %v1156_v45 = vld [vmem:[%s1478_s2] ss:$0 sm:$0xff]  ;;  %v1107_v53 = vld [vmem:[%s1479_s3 + $0x98] sm:$0xff]  ;;  %v1110_v55 = vld [vmem:[%s1479_s3 + $0xb0] sm:$0xff] }
  0x19   : > { %v250_v4 = vmul.f32 32.0, %v1170_v3  ;;  %vm254_vm1 = vweird.f32 %v1170_v3  ;;  %v1108_v54 = vld [vmem:[%s1479_s3 + $0xa0] sm:$0xff]  ;;  %v1106_v57 = vld [vmem:[%s1479_s3 + $0x90] sm:$0xff] }
  0x1a   : > { %468 = vmatpush.bf16.msrb.mxu0 %v1097_v28  ;;  %506 = vmatpush.bf16.msrb.mxu1 %v1099_v29  ;;  %v1104_v56 = vld [vmem:[%s1479_s3 + $0x80] sm:$0xff] }
  0x1b   : > { %v251_v5 = vsub.f32 1.0, %v250_v4  ;;  %544 = vmatpush.bf16.msrb.mxu2 %v1101_v26  ;;  %v1157_v58 = vld [vmem:[%s1480_s4] ss:$0 sm:$0xff]  ;;  %v1158_v59 = vld [vmem:[%s1480_s4 + $0x1] ss:$0 sm:$0xff] }
  0x1c   : > { %582 = vmatpush.bf16.msrb.mxu3 %v1103_v27  ;;  %v1159_v2 = vld [vmem:[%s1480_s4 + $0x2] ss:$0 sm:$0xff]  ;;  %v1163_v22 = vld [vmem:[%s1480_s4 + $0x6] ss:$0 sm:$0xff]  ;;  %v1164_v23 = vld [vmem:[%s1480_s4 + $0x7] ss:$0 sm:$0xff] }
  0x1d   : > { %v252_v6 = vmul.f32 %v1170_v3, %v251_v5 }
  0x1e   : > { %469 = vmatpush.bf16.msrb.mxu0 %v1096_v33  ;;  %507 = vmatpush.bf16.msrb.mxu1 %v1098_v34  ;;  %v1166_v33 = vld [vmem:[%s1480_s4 + $0x9] ss:$0 sm:$0xff] }
  0x1f   : > { %v253_v7 = vadd.f32 %v1170_v3, %v252_v6  ;;  %545 = vmatpush.bf16.msrb.mxu2 %v1100_v31 }
  0x20   : > { %583 = vmatpush.bf16.msrb.mxu3 %v1102_v32  ;;  %v1165_v32 = vld [vmem:[%s1480_s4 + $0x8] ss:$0 sm:$0xff] }
  0x21   : > { %v255_v8 = vsel %vm254_vm1, %v1170_v3, %v253_v7  ;;  %v1160_v3 = vld [vmem:[%s1480_s4 + $0x3] ss:$0 sm:$0xff] }
  0x8a   : > { %v248_v9 = vpop.xlane.xlu0 %247 }
  0x8b   : > { %v256_v10 = vmul.f32 %v255_v8, %v248_v9 }
  0x8d   : > { %v257_v11 = vsub.f32 %v242_v0, %v256_v10 }
  0x8f   : > { %v258_v12 = vmul.f32 %v257_v11, %v257_v11 }
  0x91   : > { %v259_v13 = vsel %vm245_vm0, %v258_v12, 0.0  ;;  %v1161_v12 = vld [vmem:[%s1480_s4 + $0x4] ss:$0 sm:$0xff] }
  0x92   : > { %260 = vadd.xlane.f32.xlu0 %v259_v13  ;;  %v1162_v13 = vld [vmem:[%s1480_s4 + $0x5] ss:$0 sm:$0xff] }
 0x105   : > { %v261_v14 = vpop.xlane.xlu0 %260 }
 0x106   : > { %v262_v18 = vmul.f32 0.032258064, %v261_v14 }
 0x108   : > { %1171 = vrsqrt.f32 %v262_v18  ;;  %vm270_vm2 = vcmp.eq.f32.partialorder %v262_v18, inf  ;;  %v273_v39 = vand.u32 2147483648, %v262_v18  ;;  %vm272_vm3 = vcmp.eq.f32.partialorder %v262_v18, 0.0 }
 0x10e   : > { %v1172_v24 = vpop.eup %1171 }
 0x10f   : > { %v264_v25 = vmul.f32 %v1172_v24, %v262_v18 }
 0x111   : > { %v265_v30 = vmul.f32 %v1172_v24, %v264_v25 }
 0x113   : > { %v266_v35 = vmul.f32 0.5, %v265_v30 }
 0x115   : > { %v267_v36 = vsub.f32 1.5, %v266_v35 }
 0x117   : > { %v268_v37 = vmul.f32 %v1172_v24, %v267_v36 }
 0x119   : > { %v269_v38 = vmul.f32 %v268_v37, %v262_v18 }
 0x11b   : > { %v271_v40 = vsel %vm270_vm2, %v262_v18, %v269_v38 }
 0x11c   : > { %v274_v41 = vsel %vm272_vm3, %v273_v39, %v271_v40 }
 0x11d   : > { %v275_v42 = vadd.f32 1e-06, %v274_v41 }
 0x11f   : > { %1173 = vrcp.f32 %v275_v42  ;;  %v1167_v42 = vld [vmem:[%s1480_s4 + $0xa] ss:$0 sm:$0xff] }
 0x125   : > { %v1174_v44 = vpop.eup %1173 }
 0x126   : > { %v277_v46 = vmul.f32 %v1174_v44, %v257_v11 }
 0x128   : > { %v281_v47 = vmul.f32 %v1155_v43, %v277_v46  ;;  %v1168_v43 = vld [vmem:[%s1480_s4 + $0xb] ss:$0 sm:$0xff] }
 0x12a   : > { %v285_v48 = vadd.f32 %v1156_v45, %v281_v47 }
 0x12c   : > { %v286_v49 = vpack.c.bf16 %v285_v48, %v285_v48 }
 0x12e   : > { %918 = vmatmul.msk.bf16.vlgmr.msra.gmra.mxu0 %vm245_vm0, %v286_v49  ;;  %932 = vmatmul.msk.bf16.vlgmr.msra.gmra.mxu1 %vm245_vm0, %v286_v49 }
 0x12f   : > { %947 = vmatmul.msk.bf16.vlgmr.msra.gmra.mxu2 %vm245_vm0, %v286_v49  ;;  %962 = vmatmul.msk.bf16.vlgmr.msra.gmra.mxu3 %vm245_vm0, %v286_v49 }
 0x130   : > { %696 = vmatpush.bf16.msra.mxu2 %v1109_v50  ;;  %734 = vmatpush.bf16.msra.mxu3 %v1111_v51 }
 0x131   : > { %620 = vmatpush.bf16.msra.mxu0 %v1105_v52  ;;  %658 = vmatpush.bf16.msra.mxu1 %v1107_v53 }
 0x134   : > { %697 = vmatpush.bf16.msra.mxu2 %v1108_v54  ;;  %735 = vmatpush.bf16.msra.mxu3 %v1110_v55 }
 0x135   : > { %621 = vmatpush.bf16.msra.mxu0 %v1104_v56  ;;  %659 = vmatpush.bf16.msra.mxu1 %v1106_v57 }
 0x13e   : > { %977 = vmatmul.msk.bf16.vlgmr.msrb.gmra.mxu0 %vm245_vm0, %v286_v49  ;;  %992 = vmatmul.msk.bf16.vlgmr.msrb.gmra.mxu1 %vm245_vm0, %v286_v49 }
 0x13f   : > { %1007 = vmatmul.msk.bf16.vlgmr.msrb.gmra.mxu2 %vm245_vm0, %v286_v49  ;;  %1022 = vmatmul.msk.bf16.vlgmr.msrb.gmra.mxu3 %vm245_vm0, %v286_v49 }
 0x14e   : > { %1037 = vmatmul.msk.bf16.vlgmr.msra.gmra.mxu0 %vm245_vm0, %v286_v49  ;;  %1052 = vmatmul.msk.bf16.vlgmr.msra.gmra.mxu1 %vm245_vm0, %v286_v49 }
 0x14f   : > { %1067 = vmatmul.msk.bf16.vlgmr.msra.gmra.mxu2 %vm245_vm0, %v286_v49  ;;  %1082 = vmatmul.msk.bf16.vlgmr.msra.gmra.mxu3 %vm245_vm0, %v286_v49 }
 0x1ab   : > { %v319_v60 = vpop.f32.mrf.mxu0  ;;  %v357_v61 = vpop.f32.mrf.mxu1 }
 0x1ac   : > { %v320_v62 = vadd.f32 %v1157_v58, %v319_v60  ;;  %v358_v63 = vadd.f32 %v1158_v59, %v357_v61 }
 0x1ae   : > { %v323_v0 = vpack.c.bf16 %v320_v62, %v320_v62  ;;  %v361_v1 = vpack.c.bf16 %v358_v63, %v358_v63 }
 0x1b0   : > { %325 = vst.msk [vmem:[%s1399_s25] sm:$0xf] %vm324_vm4, %v323_v0 }
 0x1b1   : > { %933 = vst.msk [vmem:[%s1399_s25 + $0x4] sm:$0xf] %vm324_vm4, %v361_v1 }
 0x1b2   : > { %v395_v4 = vpop.f32.mrf.mxu2  ;;  %v433_v5 = vpop.f32.mrf.mxu3 }
 0x1b3   : > { %v396_v6 = vadd.f32 %v1159_v2, %v395_v4  ;;  %v434_v7 = vadd.f32 %v1160_v3, %v433_v5  ;;  %v321_v8 = vpop.f32.mrf.mxu0  ;;  %v359_v9 = vpop.f32.mrf.mxu1 }
 0x1b5   : > { %v399_v10 = vpack.c.bf16 %v396_v6, %v396_v6  ;;  %v437_v11 = vpack.c.bf16 %v434_v7, %v434_v7 }
 0x1b7   : > { %948 = vst.msk [vmem:[%s1399_s25 + $0x8] sm:$0xf] %vm324_vm4, %v399_v10 }
 0x1b8   : > { %963 = vst.msk [vmem:[%s1399_s25 + $0xc] sm:$0xf] %vm324_vm4, %v437_v11  ;;  %v771_v54 = vld [vmem:[%s1399_s25] sm:$0xff] (%p1278_p3)  }
 0x1b9   : > { %772 = vst [vmem:[%s754_s30] sm:$0xff] (%p1278_p3), %v771_v54  }
 0x1ba   : > { %v397_v14 = vpop.f32.mrf.mxu2  ;;  %v435_v15 = vpop.f32.mrf.mxu3 }
 0x1bb   : > { %v471_v16 = vpop.f32.mrf.mxu0  ;;  %v509_v17 = vpop.f32.mrf.mxu1 }
 0x1bc   : > { %v472_v18 = vadd.f32 %v1161_v12, %v471_v16  ;;  %v510_v19 = vadd.f32 %v1162_v13, %v509_v17 }
 0x1be   : > { %v475_v20 = vpack.c.bf16 %v472_v18, %v472_v18  ;;  %v513_v21 = vpack.c.bf16 %v510_v19, %v510_v19 }
 0x1bf   : > { %v775_v55 = vld [vmem:[%s1399_s25 + $0x8] sm:$0xff] (%p1278_p3)  }
 0x1c0   : > { %978 = vst.msk [vmem:[%s1399_s25 + $0x10] sm:$0xf] %vm324_vm4, %v475_v20 }
 0x1c1   : > { %993 = vst.msk [vmem:[%s1399_s25 + $0x14] sm:$0xf] %vm324_vm4, %v513_v21 }
 0x1c2   : > { %v547_v24 = vpop.f32.mrf.mxu2  ;;  %v585_v25 = vpop.f32.mrf.mxu3  ;;  %776 = vst [vmem:[%s754_s30 + $0x8] sm:$0xff] (%p1278_p3), %v775_v55  }
 0x1c3   : > { %v548_v26 = vadd.f32 %v1163_v22, %v547_v24  ;;  %v586_v27 = vadd.f32 %v1164_v23, %v585_v25  ;;  %v473_v28 = vpop.f32.mrf.mxu0  ;;  %v511_v29 = vpop.f32.mrf.mxu1 }
 0x1c5   : > { %v551_v30 = vpack.c.bf16 %v548_v26, %v548_v26  ;;  %v589_v31 = vpack.c.bf16 %v586_v27, %v586_v27 }
 0x1c7   : > { %1008 = vst.msk [vmem:[%s1399_s25 + $0x18] sm:$0xf] %vm324_vm4, %v551_v30 }
 0x1c8   : > { %1023 = vst.msk [vmem:[%s1399_s25 + $0x1c] sm:$0xf] %vm324_vm4, %v589_v31  ;;  %v779_v56 = vld [vmem:[%s1399_s25 + $0x10] sm:$0xff] (%p1278_p3)  }
 0x1c9   : > { %780 = vst [vmem:[%s754_s30 + $0x20] sm:$0xff] (%p1278_p3), %v779_v56  }
 0x1ca   : > { %v549_v34 = vpop.f32.mrf.mxu2  ;;  %v587_v35 = vpop.f32.mrf.mxu3 }
 0x1cb   : > { %v623_v36 = vpop.f32.mrf.mxu0  ;;  %v661_v37 = vpop.f32.mrf.mxu1 }
 0x1cc   : > { %v624_v38 = vadd.f32 %v1165_v32, %v623_v36  ;;  %v662_v39 = vadd.f32 %v1166_v33, %v661_v37 }
 0x1ce   : > { %v627_v40 = vpack.c.bf16 %v624_v38, %v624_v38  ;;  %v665_v41 = vpack.c.bf16 %v662_v39, %v662_v39 }
 0x1cf   : > { %v783_v57 = vld [vmem:[%s1399_s25 + $0x18] sm:$0xff] (%p1278_p3)  }
 0x1d0   : > { %1038 = vst.msk [vmem:[%s1399_s25 + $0x20] sm:$0xf] %vm324_vm4, %v627_v40 }
 0x1d1   : > { %1053 = vst.msk [vmem:[%s1399_s25 + $0x24] sm:$0xf] %vm324_vm4, %v665_v41 }
 0x1d2   : > { %v699_v44 = vpop.f32.mrf.mxu2  ;;  %v737_v45 = vpop.f32.mrf.mxu3  ;;  %784 = vst [vmem:[%s754_s30 + $0x28] sm:$0xff] (%p1278_p3), %v783_v57  }
 0x1d3   : > { %v700_v46 = vadd.f32 %v1167_v42, %v699_v44  ;;  %v738_v47 = vadd.f32 %v1168_v43, %v737_v45  ;;  %v625_v48 = vpop.f32.mrf.mxu0  ;;  %v663_v49 = vpop.f32.mrf.mxu1 }
 0x1d5   : > { %v703_v50 = vpack.c.bf16 %v700_v46, %v700_v46  ;;  %v741_v51 = vpack.c.bf16 %v738_v47, %v738_v47 }
 0x1d6   : > { %750 = sbr.rel (!%p1278_p3) target bundleno = 481 (0x1e1), region = 44 }
 0x1d7   : > { %1068 = vst.msk [vmem:[%s1399_s25 + $0x28] sm:$0xf] %vm324_vm4, %v703_v50 }
 0x1d8   : > { %1083 = vst.msk [vmem:[%s1399_s25 + $0x2c] sm:$0xf] %vm324_vm4, %v741_v51  ;;  %v787_v58 = vld [vmem:[%s1399_s25 + $0x20] sm:$0xff] (%p1278_p3)  }
 0x1d9   : > { %788 = vst [vmem:[%s754_s30 + $0x40] sm:$0xff] (%p1278_p3), %v787_v58  }
 0x1da   : > { %v701_v52 = vpop.f32.mrf.mxu2  ;;  %v739_v53 = vpop.f32.mrf.mxu3 }
 0x1df   : > { %v791_v59 = vld [vmem:[%s1399_s25 + $0x28] sm:$0xff]  }
 0x1e0   : > { %792 = vst [vmem:[%s754_s30 + $0x48] sm:$0xff] %v791_v59  }
 0x1e1 PF: > { %s15_s22 = sadd.s32 1, %s1213_s22   ;;  %s1483_s18 = smov %s1201_s19 }
 0x1e2   : > { %p12_p9 = scmp.ge.s32.totalorder %s15_s22, 4   ;;  %s1484_s19 = smov %s1287_s28 }
 0x1e3   : > { %s1485_s20 = smov %s1209_s21  ;;  %s1486_s21 = smov %s1488_s24 }
 0x1e4   :  { %14 = sbr.rel (!%p12_p9) target bundleno = 3 (0x3), region = 144 }

</bundles_post_ra>
